<compile_context>
chip_gen: v6e
topology: v6e:2x2x1
jax: 0.10.0
libtpu: 0.0.40
codegen_flags: <defaults>
</compile_context>

<pallas_src>
import functools

import jax
import jax.numpy as jnp
from jax.experimental import pallas as pl
from jax.experimental.pallas import tpu as pltpu


# ----------------------------------------------------------------------------
# Pallas kernels
# ----------------------------------------------------------------------------
def _conv1_pool_kernel(p_ref, w_ref, b_ref, o_ref):
    """conv1 (as matmul) + bias + ReLU + 2x2 maxpool, transposed orientation.

    p_ref: (C*k*k, 4*M) patches, columns ordered (di, dj, b, ph, pw)
    w_ref: (OC, C*k*k)   conv1 weight, rows = output channel
    b_ref: (OC, 1)       conv1 bias
    o_ref: (OC, M)       pooled output, columns ordered (b, ph, pw)   [lane-dense]
    """
    acc = jnp.dot(w_ref[...], p_ref[...], preferred_element_type=jnp.float32)
    acc = jnp.maximum(acc + b_ref[...], 0.0)                 # bias + ReLU
    m = o_ref.shape[1]
    # The 4 members of each 2x2 pool window sit in 4 contiguous column blocks.
    pooled = jnp.maximum(jnp.maximum(acc[:, 0:m], acc[:, m:2 * m]),
                         jnp.maximum(acc[:, 2 * m:3 * m], acc[:, 3 * m:4 * m]))
    o_ref[...] = pooled.astype(o_ref.dtype)


def _conv2_fc_kernel(p_ref, w2_ref, b2_ref, w0_ref, b0_ref,
                     w1_ref, b1_ref, wf2_ref, bf2_ref, w3_ref, b3_ref,
                     o_ref, *, batch):
    """conv2 + bias + ReLU + 2x2 maxpool + flatten + fc0..fc3, fully fused.

    p_ref : (4*25*B, C*k*k) patches, rows ordered (di, dj, s, b), s=ph*5+pw
    w2_ref: (C*k*k, OC=16), b2_ref: (1, 16)
    w0_ref: (25, 16, 256)  fc0 weight grouped by pooled spatial position s
    b0_ref: (1, 256); w1_ref: (256, 120); b1_ref: (1, 120)
    wf2_ref: (120, 84); bf2_ref: (1, 84); w3_ref: (84, 64); b3_ref: (1, 64)
    o_ref : (B, 64)
    """
    # conv2 as matmul + bias + ReLU
    acc = jnp.dot(p_ref[...], w2_ref[...], preferred_element_type=jnp.float32)
    acc = jnp.maximum(acc + b2_ref[...], 0.0)                # (4*25*B, 16)

    # 2x2 maxpool: 4 contiguous row blocks hold the 4 pool-window members.
    m = acc.shape[0] // 4                                    # 25*B
    pooled = jnp.maximum(jnp.maximum(acc[0:m], acc[m:2 * m]),
                         jnp.maximum(acc[2 * m:3 * m], acc[3 * m:4 * m]))
    # pooled: (25*B, 16), rows ordered (s, b)

    # fc0: contraction over 400 = 25 spatial positions x 16 channels, done as
    # a sum of 25 small matmuls so no lane-dim reshape is needed in-kernel.
    n_s = m // batch                                         # 25
    h = jnp.dot(pooled[0:batch], w0_ref[0],
                preferred_element_type=jnp.float32)          # (B, 256)
    for s in range(1, n_s):
        h = h + jnp.dot(pooled[s * batch:(s + 1) * batch], w0_ref[s],
                        preferred_element_type=jnp.float32)
    h = jnp.maximum(h + b0_ref[...], 0.0)

    # fc1 .. fc3
    h = jnp.maximum(
        jnp.dot(h, w1_ref[...], preferred_element_type=jnp.float32) + b1_ref[...],
        0.0)
    h = jnp.maximum(
        jnp.dot(h, wf2_ref[...], preferred_element_type=jnp.float32) + bf2_ref[...],
        0.0)
    h = jnp.dot(h, w3_ref[...], preferred_element_type=jnp.float32) + b3_ref[...]
    o_ref[...] = h.astype(o_ref.dtype)


def _conv1_pool_call(p1, w1, b1):
    ckk, m4 = p1.shape
    oc = w1.shape[0]
    m = m4 // 4
    return pl.pallas_call(
        _conv1_pool_kernel,
        out_shape=jax.ShapeDtypeStruct((oc, m), jnp.float32),
        in_specs=[pl.BlockSpec(memory_space=pltpu.MemorySpace.VMEM)] * 3,
        out_specs=pl.BlockSpec(memory_space=pltpu.MemorySpace.VMEM),
    )(p1, w1, b1)


def _conv2_fc_call(p2, kp, batch):
    out_dim = kp["fc3_w"].shape[1]
    return pl.pallas_call(
        functools.partial(_conv2_fc_kernel, batch=batch),
        out_shape=jax.ShapeDtypeStruct((batch, out_dim), jnp.float32),
        in_specs=[pl.BlockSpec(memory_space=pltpu.MemorySpace.VMEM)] * 11,
        out_specs=pl.BlockSpec(memory_space=pltpu.MemorySpace.VMEM),
    )(p2, kp["conv2_w"], kp["conv2_b"], kp["fc0_w"], kp["fc0_b"],
      kp["fc1_w"], kp["fc1_b"], kp["fc2_w"], kp["fc2_b"],
      kp["fc3_w"], kp["fc3_b"])


# ----------------------------------------------------------------------------
# Tiny XLA glue: im2col patch extraction in pool-friendly order
# ----------------------------------------------------------------------------
def _conv1_patches(x):
    """x: (B, 3, 32, 32) NCHW -> (75, 4*B*196) patches.

    rows    = (c, ki, kj)              (matches torch conv-weight flatten)
    columns = (di, dj, b, ph, pw)      (pool partners in contiguous blocks)
    """
    B, C, H, W = x.shape
    K = 5
    OH, OW = H - K + 1, W - K + 1          # 28, 28
    PH, PW = OH // 2, OW // 2              # 14, 14
    slabs = [x[:, :, i:i + OH, j:j + OW] for i in range(K) for j in range(K)]
    s = jnp.stack(slabs, 0).reshape(K, K, B, C, PH, 2, PW, 2)
    # (ki,kj,b,c,ph,di,pw,dj) -> (c,ki,kj,di,dj,b,ph,pw)
    s = s.transpose(3, 0, 1, 5, 7, 2, 4, 6)
    return s.reshape(C * K * K, 4 * B * PH * PW)


def _conv2_patches(h1, batch):
    """h1: (6, B*14*14) pooled conv1 (columns = (b, ph, pw)) -> (4*25*B, 150).

    rows    = (di, dj, s=ph*5+pw, b)
    columns = (c, ki, kj)              (matches torch conv-weight flatten)
    """
    C = h1.shape[0]                        # 6
    K = 5
    y = h1.reshape(C, batch, 14, 14)
    OH = OW = 10
    PH = PW = 5
    slabs = [y[:, :, i:i + OH, j:j + OW] for i in range(K) for j in range(K)]
    s = jnp.stack(slabs, 0).reshape(K, K, C, batch, PH, 2, PW, 2)
    # (ki,kj,c,b,ph,di,pw,dj) -> (di,dj,ph,pw,b,c,ki,kj)
    s = s.transpose(5, 7, 4, 6, 3, 2, 0, 1)
    return s.reshape(4 * PH * PW * batch, C * K * K)


# ----------------------------------------------------------------------------
# Parameters: PyTorch-layout init + one-time kernel-layout preparation
# ----------------------------------------------------------------------------
def init_params(key):
    """PyTorch-layout params (conv: (OC,C,k,k); fc: (out,in); bias: (out,))."""
    def uni(k, shape, fan_in):
        bound = 1.0 / float(fan_in) ** 0.5
        return jax.random.uniform(k, shape, jnp.float32, -bound, bound)

    ks = jax.random.split(key, 12)
    return {
        "conv1_w": uni(ks[0], (6, 3, 5, 5), 3 * 25),
        "conv1_b": uni(ks[1], (6,), 3 * 25),
        "conv2_w": uni(ks[2], (16, 6, 5, 5), 6 * 25),
        "conv2_b": uni(ks[3], (16,), 6 * 25),
        "fc0_w": uni(ks[4], (256, 400), 400),
        "fc0_b": uni(ks[5], (256,), 400),
        "fc1_w": uni(ks[6], (120, 256), 256),
        "fc1_b": uni(ks[7], (120,), 256),
        "fc2_w": uni(ks[8], (84, 120), 120),
        "fc2_b": uni(ks[9], (84,), 120),
        "fc3_w": uni(ks[10], (64, 84), 84),
        "fc3_b": uni(ks[11], (64,), 84),
    }


def prepare_kernel_params(p):
    """One-time relayout of PyTorch-style params into kernel-friendly layout."""
    return {
        "conv1_w": p["conv1_w"].reshape(6, 75),          # (OC, C*k*k)
        "conv1_b": p["conv1_b"].reshape(6, 1),
        "conv2_w": p["conv2_w"].reshape(16, 150).T,      # (C*k*k, OC)
        "conv2_b": p["conv2_b"].reshape(1, 16),
        # torch flatten order of (16,5,5) is (c, s); kernel consumes (s, c).
        "fc0_w": p["fc0_w"].reshape(256, 16, 25).transpose(2, 1, 0),  # (25,16,256)
        "fc0_b": p["fc0_b"].reshape(1, 256),
        "fc1_w": p["fc1_w"].T, "fc1_b": p["fc1_b"].reshape(1, -1),
        "fc2_w": p["fc2_w"].T, "fc2_b": p["fc2_b"].reshape(1, -1),
        "fc3_w": p["fc3_w"].T, "fc3_b": p["fc3_b"].reshape(1, -1),
    }


# ----------------------------------------------------------------------------
# Forward passes
# ----------------------------------------------------------------------------
@jax.jit
def encoder_forward(kparams, x):
    """Pallas forward: 2 fused kernels + tiny XLA patch-extraction glue."""
    batch = x.shape[0]
    p1 = _conv1_patches(x)                                          # (75, 4*B*196)
    h1 = _conv1_pool_call(p1, kparams["conv1_w"], kparams["conv1_b"])  # (6, B*196)
    p2 = _conv2_patches(h1, batch)                                  # (4*25*B, 150)
    return _conv2_fc_call(p2, kparams, batch)                       # (B, 64)


@jax.jit
def encoder_reference(params, x):
    """Pure-JAX reference mirroring the PyTorch module (for validation)."""
    def conv(z, w, b):
        y = jax.lax.conv_general_dilated(
            z, w, (1, 1), "VALID",
            dimension_numbers=("NCHW", "OIHW", "NCHW"))
        return jax.nn.relu(y + b.reshape(1, -1, 1, 1))

    def pool(z):
        return jax.lax.reduce_window(z, -jnp.inf, jax.lax.max,
                                     (1, 1, 2, 2), (1, 1, 2, 2), "VALID")

    out = pool(conv(x, params["conv1_w"], params["conv1_b"]))
    out = pool(conv(out, params["conv2_w"], params["conv2_b"]))
    out = out.reshape(out.shape[0], -1)                    # NCHW flatten
    out = jax.nn.relu(out @ params["fc0_w"].T + params["fc0_b"])
    out = jax.nn.relu(out @ params["fc1_w"].T + params["fc1_b"])
    out = jax.nn.relu(out @ params["fc2_w"].T + params["fc2_b"])
    out = out @ params["fc3_w"].T + params["fc3_b"]
    return out


if __name__ == "__main__":
    key = jax.random.PRNGKey(0)
    k_params, k_x = jax.random.split(key)
    params = init_params(k_params)                 # PyTorch-layout
    kparams = prepare_kernel_params(params)        # kernel-layout (one-time)
    # fc0 expects 400 = 16*5*5 features -> input spatial must be 32x32.
    x = jax.random.normal(k_x, (2, 3, 32, 32), dtype=jnp.float32)

    out = jax.block_until_ready(encoder_forward(kparams, x))
    assert out.shape == (2, 64), out.shape
    assert out.dtype == jnp.float32

    ref = jax.block_until_ready(encoder_reference(params, x))
    assert bool(jnp.allclose(out, ref, rtol=5e-2, atol=5e-2)), \
        float(jnp.max(jnp.abs(out - ref)))

    print("KERNEL_OK")
</pallas_src>

<mosaic_0001>
module attributes {stable_mosaic.version = 11 : i64} {
  func.func @_conv1_pool_kernel(%arg0: memref<75x1568xf32, #tpu.memory_space<vmem>>, %arg1: memref<6x75xf32, #tpu.memory_space<vmem>>, %arg2: memref<6x1xf32, #tpu.memory_space<vmem>>, %arg3: memref<6x392xf32, #tpu.memory_space<vmem>>) attributes {dimension_semantics = [], scalar_prefetch = 0 : i64, scratch_operands = 0 : i64, tpu.core_type = #tpu.core_type<tc>} {
    %c0 = arith.constant 0 : index
    %c0_0 = arith.constant 0 : index
    %0 = vector.load %arg1[%c0, %c0_0] : memref<6x75xf32, #tpu.memory_space<vmem>>, vector<6x75xf32>
    %c0_1 = arith.constant 0 : index
    %c0_2 = arith.constant 0 : index
    %1 = vector.load %arg0[%c0_1, %c0_2] : memref<75x1568xf32, #tpu.memory_space<vmem>>, vector<75x1568xf32>
    %cst = arith.constant dense<0.000000e+00> : vector<6x1568xf32>
    %2 = tpu.matmul %0, %1, %cst {dimension_numbers = #tpu.dot_dimension_numbers<[1], [0], [0], [1], [0, 0, 1, 1], [], []>} : vector<6x75xf32>, vector<75x1568xf32>, vector<6x1568xf32> -> vector<6x1568xf32>
    %c0_3 = arith.constant 0 : index
    %c0_4 = arith.constant 0 : index
    %3 = vector.load %arg2[%c0_3, %c0_4] : memref<6x1xf32, #tpu.memory_space<vmem>>, vector<6x1xf32>
    %4 = vector.broadcast %3 : vector<6x1xf32> to vector<6x1568xf32>
    %5 = arith.addf %2, %4 : vector<6x1568xf32>
    %cst_5 = arith.constant 0.000000e+00 : f32
    %6 = vector.broadcast %cst_5 : f32 to vector<6x1568xf32>
    %7 = arith.maximumf %5, %6 : vector<6x1568xf32>
    %8 = vector.extract_strided_slice %7 {offsets = [0, 0], sizes = [6, 392], strides = [1, 1]} : vector<6x1568xf32> to vector<6x392xf32>
    %9 = vector.extract_strided_slice %7 {offsets = [0, 392], sizes = [6, 392], strides = [1, 1]} : vector<6x1568xf32> to vector<6x392xf32>
    %10 = arith.maximumf %8, %9 : vector<6x392xf32>
    %11 = vector.extract_strided_slice %7 {offsets = [0, 784], sizes = [6, 392], strides = [1, 1]} : vector<6x1568xf32> to vector<6x392xf32>
    %12 = vector.extract_strided_slice %7 {offsets = [0, 1176], sizes = [6, 392], strides = [1, 1]} : vector<6x1568xf32> to vector<6x392xf32>
    %13 = arith.maximumf %11, %12 : vector<6x392xf32>
    %14 = arith.maximumf %10, %13 : vector<6x392xf32>
    %c0_6 = arith.constant 0 : index
    %c0_7 = arith.constant 0 : index
    %15 = vector.load %arg3[%c0_6, %c0_7] : memref<6x392xf32, #tpu.memory_space<vmem>>, vector<6x392xf32>
    tpu.vector_store %arg3[%c0_6, %c0_7], %14 {strides = array<i32>} : memref<6x392xf32, #tpu.memory_space<vmem>>, vector<6x392xf32>,
    return
  }
}

module attributes {stable_mosaic.version = 11 : i64} {
  func.func @_conv2_fc_kernel(%arg0: memref<200x150xf32, #tpu.memory_space<vmem>>, %arg1: memref<150x16xf32, #tpu.memory_space<vmem>>, %arg2: memref<1x16xf32, #tpu.memory_space<vmem>>, %arg3: memref<25x16x256xf32, #tpu.memory_space<vmem>>, %arg4: memref<1x256xf32, #tpu.memory_space<vmem>>, %arg5: memref<256x120xf32, #tpu.memory_space<vmem>>, %arg6: memref<1x120xf32, #tpu.memory_space<vmem>>, %arg7: memref<120x84xf32, #tpu.memory_space<vmem>>, %arg8: memref<1x84xf32, #tpu.memory_space<vmem>>, %arg9: memref<84x64xf32, #tpu.memory_space<vmem>>, %arg10: memref<1x64xf32, #tpu.memory_space<vmem>>, %arg11: memref<2x64xf32, #tpu.memory_space<vmem>>) attributes {dimension_semantics = [], scalar_prefetch = 0 : i64, scratch_operands = 0 : i64, tpu.core_type = #tpu.core_type<tc>} {
    %c0 = arith.constant 0 : index
    %c0_0 = arith.constant 0 : index
    %0 = vector.load %arg0[%c0, %c0_0] : memref<200x150xf32, #tpu.memory_space<vmem>>, vector<200x150xf32>
    %c0_1 = arith.constant 0 : index
    %c0_2 = arith.constant 0 : index
    %1 = vector.load %arg1[%c0_1, %c0_2] : memref<150x16xf32, #tpu.memory_space<vmem>>, vector<150x16xf32>
    %cst = arith.constant dense<0.000000e+00> : vector<200x16xf32>
    %2 = tpu.matmul %0, %1, %cst {dimension_numbers = #tpu.dot_dimension_numbers<[1], [0], [0], [1], [0, 0, 1, 1], [], []>} : vector<200x150xf32>, vector<150x16xf32>, vector<200x16xf32> -> vector<200x16xf32>
    %c0_3 = arith.constant 0 : index
    %c0_4 = arith.constant 0 : index
    %3 = vector.load %arg2[%c0_3, %c0_4] : memref<1x16xf32, #tpu.memory_space<vmem>>, vector<1x16xf32>
    %4 = vector.broadcast %3 : vector<1x16xf32> to vector<200x16xf32>
    %5 = arith.addf %2, %4 : vector<200x16xf32>
    %cst_5 = arith.constant 0.000000e+00 : f32
    %6 = vector.broadcast %cst_5 : f32 to vector<200x16xf32>
    %7 = arith.maximumf %5, %6 : vector<200x16xf32>
    %8 = vector.extract_strided_slice %7 {offsets = [0, 0], sizes = [50, 16], strides = [1, 1]} : vector<200x16xf32> to vector<50x16xf32>
    %9 = vector.extract_strided_slice %7 {offsets = [50, 0], sizes = [50, 16], strides = [1, 1]} : vector<200x16xf32> to vector<50x16xf32>
    %10 = arith.maximumf %8, %9 : vector<50x16xf32>
    %11 = vector.extract_strided_slice %7 {offsets = [100, 0], sizes = [50, 16], strides = [1, 1]} : vector<200x16xf32> to vector<50x16xf32>
    %12 = vector.extract_strided_slice %7 {offsets = [150, 0], sizes = [50, 16], strides = [1, 1]} : vector<200x16xf32> to vector<50x16xf32>
    %13 = arith.maximumf %11, %12 : vector<50x16xf32>
    %14 = arith.maximumf %10, %13 : vector<50x16xf32>
    %15 = vector.extract_strided_slice %14 {offsets = [0, 0], sizes = [2, 16], strides = [1, 1]} : vector<50x16xf32> to vector<2x16xf32>
    %c0_6 = arith.constant 0 : index
    %c0_7 = arith.constant 0 : index
    %c0_8 = arith.constant 0 : index
    %16 = vector.load %arg3[%c0_6, %c0_7, %c0_8] : memref<25x16x256xf32, #tpu.memory_space<vmem>>, vector<1x16x256xf32>
    %17 = vector.shape_cast %16 : vector<1x16x256xf32> to vector<16x256xf32>
    %cst_9 = arith.constant dense<0.000000e+00> : vector<2x256xf32>
    %18 = tpu.matmul %15, %17, %cst_9 {dimension_numbers = #tpu.dot_dimension_numbers<[1], [0], [0], [1], [0, 0, 1, 1], [], []>} : vector<2x16xf32>, vector<16x256xf32>, vector<2x256xf32> -> vector<2x256xf32>
    %19 = vector.extract_strided_slice %14 {offsets = [2, 0], sizes = [2, 16], strides = [1, 1]} : vector<50x16xf32> to vector<2x16xf32>
    %c1 = arith.constant 1 : index
    %c0_10 = arith.constant 0 : index
    %c0_11 = arith.constant 0 : index
    %20 = vector.load %arg3[%c1, %c0_10, %c0_11] : memref<25x16x256xf32, #tpu.memory_space<vmem>>, vector<1x16x256xf32>
    %21 = vector.shape_cast %20 : vector<1x16x256xf32> to vector<16x256xf32>
    %cst_12 = arith.constant dense<0.000000e+00> : vector<2x256xf32>
    %22 = tpu.matmul %19, %21, %cst_12 {dimension_numbers = #tpu.dot_dimension_numbers<[1], [0], [0], [1], [0, 0, 1, 1], [], []>} : vector<2x16xf32>, vector<16x256xf32>, vector<2x256xf32> -> vector<2x256xf32>
    %23 = arith.addf %18, %22 : vector<2x256xf32>
    %24 = vector.extract_strided_slice %14 {offsets = [4, 0], sizes = [2, 16], strides = [1, 1]} : vector<50x16xf32> to vector<2x16xf32>
    %c2 = arith.constant 2 : index
    %c0_13 = arith.constant 0 : index
    %c0_14 = arith.constant 0 : index
    %25 = vector.load %arg3[%c2, %c0_13, %c0_14] : memref<25x16x256xf32, #tpu.memory_space<vmem>>, vector<1x16x256xf32>
    %26 = vector.shape_cast %25 : vector<1x16x256xf32> to vector<16x256xf32>
    %cst_15 = arith.constant dense<0.000000e+00> : vector<2x256xf32>
    %27 = tpu.matmul %24, %26, %cst_15 {dimension_numbers = #tpu.dot_dimension_numbers<[1], [0], [0], [1], [0, 0, 1, 1], [], []>} : vector<2x16xf32>, vector<16x256xf32>, vector<2x256xf32> -> vector<2x256xf32>
    %28 = arith.addf %23, %27 : vector<2x256xf32>
    %29 = vector.extract_strided_slice %14 {offsets = [6, 0], sizes = [2, 16], strides = [1, 1]} : vector<50x16xf32> to vector<2x16xf32>
    %c3 = arith.constant 3 : index
    %c0_16 = arith.constant 0 : index
    %c0_17 = arith.constant 0 : index
    %30 = vector.load %arg3[%c3, %c0_16, %c0_17] : memref<25x16x256xf32, #tpu.memory_space<vmem>>, vector<1x16x256xf32>
    %31 = vector.shape_cast %30 : vector<1x16x256xf32> to vector<16x256xf32>
    %cst_18 = arith.constant dense<0.000000e+00> : vector<2x256xf32>
    %32 = tpu.matmul %29, %31, %cst_18 {dimension_numbers = #tpu.dot_dimension_numbers<[1], [0], [0], [1], [0, 0, 1, 1], [], []>} : vector<2x16xf32>, vector<16x256xf32>, vector<2x256xf32> -> vector<2x256xf32>
    %33 = arith.addf %28, %32 : vector<2x256xf32>
    %34 = vector.extract_strided_slice %14 {offsets = [8, 0], sizes = [2, 16], strides = [1, 1]} : vector<50x16xf32> to vector<2x16xf32>
    %c4 = arith.constant 4 : index
    %c0_19 = arith.constant 0 : index
    %c0_20 = arith.constant 0 : index
    %35 = vector.load %arg3[%c4, %c0_19, %c0_20] : memref<25x16x256xf32, #tpu.memory_space<vmem>>, vector<1x16x256xf32>
    %36 = vector.shape_cast %35 : vector<1x16x256xf32> to vector<16x256xf32>
    %cst_21 = arith.constant dense<0.000000e+00> : vector<2x256xf32>
    %37 = tpu.matmul %34, %36, %cst_21 {dimension_numbers = #tpu.dot_dimension_numbers<[1], [0], [0], [1], [0, 0, 1, 1], [], []>} : vector<2x16xf32>, vector<16x256xf32>, vector<2x256xf32> -> vector<2x256xf32>
    %38 = arith.addf %33, %37 : vector<2x256xf32>
    %39 = vector.extract_strided_slice %14 {offsets = [10, 0], sizes = [2, 16], strides = [1, 1]} : vector<50x16xf32> to vector<2x16xf32>
    %c5 = arith.constant 5 : index
    %c0_22 = arith.constant 0 : index
    %c0_23 = arith.constant 0 : index
    %40 = vector.load %arg3[%c5, %c0_22, %c0_23] : memref<25x16x256xf32, #tpu.memory_space<vmem>>, vector<1x16x256xf32>
    %41 = vector.shape_cast %40 : vector<1x16x256xf32> to vector<16x256xf32>
    %cst_24 = arith.constant dense<0.000000e+00> : vector<2x256xf32>
    %42 = tpu.matmul %39, %41, %cst_24 {dimension_numbers = #tpu.dot_dimension_numbers<[1], [0], [0], [1], [0, 0, 1, 1], [], []>} : vector<2x16xf32>, vector<16x256xf32>, vector<2x256xf32> -> vector<2x256xf32>
    %43 = arith.addf %38, %42 : vector<2x256xf32>
    %44 = vector.extract_strided_slice %14 {offsets = [12, 0], sizes = [2, 16], strides = [1, 1]} : vector<50x16xf32> to vector<2x16xf32>
    %c6 = arith.constant 6 : index
    %c0_25 = arith.constant 0 : index
    %c0_26 = arith.constant 0 : index
    %45 = vector.load %arg3[%c6, %c0_25, %c0_26] : memref<25x16x256xf32, #tpu.memory_space<vmem>>, vector<1x16x256xf32>
    %46 = vector.shape_cast %45 : vector<1x16x256xf32> to vector<16x256xf32>
    %cst_27 = arith.constant dense<0.000000e+00> : vector<2x256xf32>
    %47 = tpu.matmul %44, %46, %cst_27 {dimension_numbers = #tpu.dot_dimension_numbers<[1], [0], [0], [1], [0, 0, 1, 1], [], []>} : vector<2x16xf32>, vector<16x256xf32>, vector<2x256xf32> -> vector<2x256xf32>
    %48 = arith.addf %43, %47 : vector<2x256xf32>
    %49 = vector.extract_strided_slice %14 {offsets = [14, 0], sizes = [2, 16], strides = [1, 1]} : vector<50x16xf32> to vector<2x16xf32>
    %c7 = arith.constant 7 : index
    %c0_28 = arith.constant 0 : index
    %c0_29 = arith.constant 0 : index
    %50 = vector.load %arg3[%c7, %c0_28, %c0_29] : memref<25x16x256xf32, #tpu.memory_space<vmem>>, vector<1x16x256xf32>
    %51 = vector.shape_cast %50 : vector<1x16x256xf32> to vector<16x256xf32>
    %cst_30 = arith.constant dense<0.000000e+00> : vector<2x256xf32>
    %52 = tpu.matmul %49, %51, %cst_30 {dimension_numbers = #tpu.dot_dimension_numbers<[1], [0], [0], [1], [0, 0, 1, 1], [], []>} : vector<2x16xf32>, vector<16x256xf32>, vector<2x256xf32> -> vector<2x256xf32>
    %53 = arith.addf %48, %52 : vector<2x256xf32>
    %54 = vector.extract_strided_slice %14 {offsets = [16, 0], sizes = [2, 16], strides = [1, 1]} : vector<50x16xf32> to vector<2x16xf32>
    %c8 = arith.constant 8 : index
    %c0_31 = arith.constant 0 : index
    %c0_32 = arith.constant 0 : index
    %55 = vector.load %arg3[%c8, %c0_31, %c0_32] : memref<25x16x256xf32, #tpu.memory_space<vmem>>, vector<1x16x256xf32>
    %56 = vector.shape_cast %55 : vector<1x16x256xf32> to vector<16x256xf32>
    %cst_33 = arith.constant dense<0.000000e+00> : vector<2x256xf32>
    %57 = tpu.matmul %54, %56, %cst_33 {dimension_numbers = #tpu.dot_dimension_numbers<[1], [0], [0], [1], [0, 0, 1, 1], [], []>} : vector<2x16xf32>, vector<16x256xf32>, vector<2x256xf32> -> vector<2x256xf32>
    %58 = arith.addf %53, %57 : vector<2x256xf32>
    %59 = vector.extract_strided_slice %14 {offsets = [18, 0], sizes = [2, 16], strides = [1, 1]} : vector<50x16xf32> to vector<2x16xf32>
    %c9 = arith.constant 9 : index
    %c0_34 = arith.constant 0 : index
    %c0_35 = arith.constant 0 : index
    %60 = vector.load %arg3[%c9, %c0_34, %c0_35] : memref<25x16x256xf32, #tpu.memory_space<vmem>>, vector<1x16x256xf32>
    %61 = vector.shape_cast %60 : vector<1x16x256xf32> to vector<16x256xf32>
    %cst_36 = arith.constant dense<0.000000e+00> : vector<2x256xf32>
    %62 = tpu.matmul %59, %61, %cst_36 {dimension_numbers = #tpu.dot_dimension_numbers<[1], [0], [0], [1], [0, 0, 1, 1], [], []>} : vector<2x16xf32>, vector<16x256xf32>, vector<2x256xf32> -> vector<2x256xf32>
    %63 = arith.addf %58, %62 : vector<2x256xf32>
    %64 = vector.extract_strided_slice %14 {offsets = [20, 0], sizes = [2, 16], strides = [1, 1]} : vector<50x16xf32> to vector<2x16xf32>
    %c10 = arith.constant 10 : index
    %c0_37 = arith.constant 0 : index
    %c0_38 = arith.constant 0 : index
    %65 = vector.load %arg3[%c10, %c0_37, %c0_38] : memref<25x16x256xf32, #tpu.memory_space<vmem>>, vector<1x16x256xf32>
    %66 = vector.shape_cast %65 : vector<1x16x256xf32> to vector<16x256xf32>
    %cst_39 = arith.constant dense<0.000000e+00> : vector<2x256xf32>
    %67 = tpu.matmul %64, %66, %cst_39 {dimension_numbers = #tpu.dot_dimension_numbers<[1], [0], [0], [1], [0, 0, 1, 1], [], []>} : vector<2x16xf32>, vector<16x256xf32>, vector<2x256xf32> -> vector<2x256xf32>
    %68 = arith.addf %63, %67 : vector<2x256xf32>
    %69 = vector.extract_strided_slice %14 {offsets = [22, 0], sizes = [2, 16], strides = [1, 1]} : vector<50x16xf32> to vector<2x16xf32>
    %c11 = arith.constant 11 : index
    %c0_40 = arith.constant 0 : index
    %c0_41 = arith.constant 0 : index
    %70 = vector.load %arg3[%c11, %c0_40, %c0_41] : memref<25x16x256xf32, #tpu.memory_space<vmem>>, vector<1x16x256xf32>
    %71 = vector.shape_cast %70 : vector<1x16x256xf32> to vector<16x256xf32>
    %cst_42 = arith.constant dense<0.000000e+00> : vector<2x256xf32>
    %72 = tpu.matmul %69, %71, %cst_42 {dimension_numbers = #tpu.dot_dimension_numbers<[1], [0], [0], [1], [0, 0, 1, 1], [], []>} : vector<2x16xf32>, vector<16x256xf32>, vector<2x256xf32> -> vector<2x256xf32>
    %73 = arith.addf %68, %72 : vector<2x256xf32>
    %74 = vector.extract_strided_slice %14 {offsets = [24, 0], sizes = [2, 16], strides = [1, 1]} : vector<50x16xf32> to vector<2x16xf32>
    %c12 = arith.constant 12 : index
    %c0_43 = arith.constant 0 : index
    %c0_44 = arith.constant 0 : index
    %75 = vector.load %arg3[%c12, %c0_43, %c0_44] : memref<25x16x256xf32, #tpu.memory_space<vmem>>, vector<1x16x256xf32>
    %76 = vector.shape_cast %75 : vector<1x16x256xf32> to vector<16x256xf32>
    %cst_45 = arith.constant dense<0.000000e+00> : vector<2x256xf32>
    %77 = tpu.matmul %74, %76, %cst_45 {dimension_numbers = #tpu.dot_dimension_numbers<[1], [0], [0], [1], [0, 0, 1, 1], [], []>} : vector<2x16xf32>, vector<16x256xf32>, vector<2x256xf32> -> vector<2x256xf32>
    %78 = arith.addf %73, %77 : vector<2x256xf32>
    %79 = vector.extract_strided_slice %14 {offsets = [26, 0], sizes = [2, 16], strides = [1, 1]} : vector<50x16xf32> to vector<2x16xf32>
    %c13 = arith.constant 13 : index
    %c0_46 = arith.constant 0 : index
    %c0_47 = arith.constant 0 : index
    %80 = vector.load %arg3[%c13, %c0_46, %c0_47] : memref<25x16x256xf32, #tpu.memory_space<vmem>>, vector<1x16x256xf32>
    %81 = vector.shape_cast %80 : vector<1x16x256xf32> to vector<16x256xf32>
    %cst_48 = arith.constant dense<0.000000e+00> : vector<2x256xf32>
    %82 = tpu.matmul %79, %81, %cst_48 {dimension_numbers = #tpu.dot_dimension_numbers<[1], [0], [0], [1], [0, 0, 1, 1], [], []>} : vector<2x16xf32>, vector<16x256xf32>, vector<2x256xf32> -> vector<2x256xf32>
    %83 = arith.addf %78, %82 : vector<2x256xf32>
    %84 = vector.extract_strided_slice %14 {offsets = [28, 0], sizes = [2, 16], strides = [1, 1]} : vector<50x16xf32> to vector<2x16xf32>
    %c14 = arith.constant 14 : index
    %c0_49 = arith.constant 0 : index
    %c0_50 = arith.constant 0 : index
    %85 = vector.load %arg3[%c14, %c0_49, %c0_50] : memref<25x16x256xf32, #tpu.memory_space<vmem>>, vector<1x16x256xf32>
    %86 = vector.shape_cast %85 : vector<1x16x256xf32> to vector<16x256xf32>
    %cst_51 = arith.constant dense<0.000000e+00> : vector<2x256xf32>
    %87 = tpu.matmul %84, %86, %cst_51 {dimension_numbers = #tpu.dot_dimension_numbers<[1], [0], [0], [1], [0, 0, 1, 1], [], []>} : vector<2x16xf32>, vector<16x256xf32>, vector<2x256xf32> -> vector<2x256xf32>
    %88 = arith.addf %83, %87 : vector<2x256xf32>
    %89 = vector.extract_strided_slice %14 {offsets = [30, 0], sizes = [2, 16], strides = [1, 1]} : vector<50x16xf32> to vector<2x16xf32>
    %c15 = arith.constant 15 : index
    %c0_52 = arith.constant 0 : index
    %c0_53 = arith.constant 0 : index
    %90 = vector.load %arg3[%c15, %c0_52, %c0_53] : memref<25x16x256xf32, #tpu.memory_space<vmem>>, vector<1x16x256xf32>
    %91 = vector.shape_cast %90 : vector<1x16x256xf32> to vector<16x256xf32>
    %cst_54 = arith.constant dense<0.000000e+00> : vector<2x256xf32>
    %92 = tpu.matmul %89, %91, %cst_54 {dimension_numbers = #tpu.dot_dimension_numbers<[1], [0], [0], [1], [0, 0, 1, 1], [], []>} : vector<2x16xf32>, vector<16x256xf32>, vector<2x256xf32> -> vector<2x256xf32>
    %93 = arith.addf %88, %92 : vector<2x256xf32>
    %94 = vector.extract_strided_slice %14 {offsets = [32, 0], sizes = [2, 16], strides = [1, 1]} : vector<50x16xf32> to vector<2x16xf32>
    %c16 = arith.constant 16 : index
    %c0_55 = arith.constant 0 : index
    %c0_56 = arith.constant 0 : index
    %95 = vector.load %arg3[%c16, %c0_55, %c0_56] : memref<25x16x256xf32, #tpu.memory_space<vmem>>, vector<1x16x256xf32>
    %96 = vector.shape_cast %95 : vector<1x16x256xf32> to vector<16x256xf32>
    %cst_57 = arith.constant dense<0.000000e+00> : vector<2x256xf32>
    %97 = tpu.matmul %94, %96, %cst_57 {dimension_numbers = #tpu.dot_dimension_numbers<[1], [0], [0], [1], [0, 0, 1, 1], [], []>} : vector<2x16xf32>, vector<16x256xf32>, vector<2x256xf32> -> vector<2x256xf32>
    %98 = arith.addf %93, %97 : vector<2x256xf32>
    %99 = vector.extract_strided_slice %14 {offsets = [34, 0], sizes = [2, 16], strides = [1, 1]} : vector<50x16xf32> to vector<2x16xf32>
    %c17 = arith.constant 17 : index
    %c0_58 = arith.constant 0 : index
    %c0_59 = arith.constant 0 : index
    %100 = vector.load %arg3[%c17, %c0_58, %c0_59] : memref<25x16x256xf32, #tpu.memory_space<vmem>>, vector<1x16x256xf32>
    %101 = vector.shape_cast %100 : vector<1x16x256xf32> to vector<16x256xf32>
    %cst_60 = arith.constant dense<0.000000e+00> : vector<2x256xf32>
    %102 = tpu.matmul %99, %101, %cst_60 {dimension_numbers = #tpu.dot_dimension_numbers<[1], [0], [0], [1], [0, 0, 1, 1], [], []>} : vector<2x16xf32>, vector<16x256xf32>, vector<2x256xf32> -> vector<2x256xf32>
    %103 = arith.addf %98, %102 : vector<2x256xf32>
    %104 = vector.extract_strided_slice %14 {offsets = [36, 0], sizes = [2, 16], strides = [1, 1]} : vector<50x16xf32> to vector<2x16xf32>
    %c18 = arith.constant 18 : index
    %c0_61 = arith.constant 0 : index
    %c0_62 = arith.constant 0 : index
    %105 = vector.load %arg3[%c18, %c0_61, %c0_62] : memref<25x16x256xf32, #tpu.memory_space<vmem>>, vector<1x16x256xf32>
    %106 = vector.shape_cast %105 : vector<1x16x256xf32> to vector<16x256xf32>
    %cst_63 = arith.constant dense<0.000000e+00> : vector<2x256xf32>
    %107 = tpu.matmul %104, %106, %cst_63 {dimension_numbers = #tpu.dot_dimension_numbers<[1], [0], [0], [1], [0, 0, 1, 1], [], []>} : vector<2x16xf32>, vector<16x256xf32>, vector<2x256xf32> -> vector<2x256xf32>
    %108 = arith.addf %103, %107 : vector<2x256xf32>
    %109 = vector.extract_strided_slice %14 {offsets = [38, 0], sizes = [2, 16], strides = [1, 1]} : vector<50x16xf32> to vector<2x16xf32>
    %c19 = arith.constant 19 : index
    %c0_64 = arith.constant 0 : index
    %c0_65 = arith.constant 0 : index
    %110 = vector.load %arg3[%c19, %c0_64, %c0_65] : memref<25x16x256xf32, #tpu.memory_space<vmem>>, vector<1x16x256xf32>
    %111 = vector.shape_cast %110 : vector<1x16x256xf32> to vector<16x256xf32>
    %cst_66 = arith.constant dense<0.000000e+00> : vector<2x256xf32>
    %112 = tpu.matmul %109, %111, %cst_66 {dimension_numbers = #tpu.dot_dimension_numbers<[1], [0], [0], [1], [0, 0, 1, 1], [], []>} : vector<2x16xf32>, vector<16x256xf32>, vector<2x256xf32> -> vector<2x256xf32>
    %113 = arith.addf %108, %112 : vector<2x256xf32>
    %114 = vector.extract_strided_slice %14 {offsets = [40, 0], sizes = [2, 16], strides = [1, 1]} : vector<50x16xf32> to vector<2x16xf32>
    %c20 = arith.constant 20 : index
    %c0_67 = arith.constant 0 : index
    %c0_68 = arith.constant 0 : index
    %115 = vector.load %arg3[%c20, %c0_67, %c0_68] : memref<25x16x256xf32, #tpu.memory_space<vmem>>, vector<1x16x256xf32>
    %116 = vector.shape_cast %115 : vector<1x16x256xf32> to vector<16x256xf32>
    %cst_69 = arith.constant dense<0.000000e+00> : vector<2x256xf32>
    %117 = tpu.matmul %114, %116, %cst_69 {dimension_numbers = #tpu.dot_dimension_numbers<[1], [0], [0], [1], [0, 0, 1, 1], [], []>} : vector<2x16xf32>, vector<16x256xf32>, vector<2x256xf32> -> vector<2x256xf32>
    %118 = arith.addf %113, %117 : vector<2x256xf32>
    %119 = vector.extract_strided_slice %14 {offsets = [42, 0], sizes = [2, 16], strides = [1, 1]} : vector<50x16xf32> to vector<2x16xf32>
    %c21 = arith.constant 21 : index
    %c0_70 = arith.constant 0 : index
    %c0_71 = arith.constant 0 : index
    %120 = vector.load %arg3[%c21, %c0_70, %c0_71] : memref<25x16x256xf32, #tpu.memory_space<vmem>>, vector<1x16x256xf32>
    %121 = vector.shape_cast %120 : vector<1x16x256xf32> to vector<16x256xf32>
    %cst_72 = arith.constant dense<0.000000e+00> : vector<2x256xf32>
    %122 = tpu.matmul %119, %121, %cst_72 {dimension_numbers = #tpu.dot_dimension_numbers<[1], [0], [0], [1], [0, 0, 1, 1], [], []>} : vector<2x16xf32>, vector<16x256xf32>, vector<2x256xf32> -> vector<2x256xf32>
    %123 = arith.addf %118, %122 : vector<2x256xf32>
    %124 = vector.extract_strided_slice %14 {offsets = [44, 0], sizes = [2, 16], strides = [1, 1]} : vector<50x16xf32> to vector<2x16xf32>
    %c22 = arith.constant 22 : index
    %c0_73 = arith.constant 0 : index
    %c0_74 = arith.constant 0 : index
    %125 = vector.load %arg3[%c22, %c0_73, %c0_74] : memref<25x16x256xf32, #tpu.memory_space<vmem>>, vector<1x16x256xf32>
    %126 = vector.shape_cast %125 : vector<1x16x256xf32> to vector<16x256xf32>
    %cst_75 = arith.constant dense<0.000000e+00> : vector<2x256xf32>
    %127 = tpu.matmul %124, %126, %cst_75 {dimension_numbers = #tpu.dot_dimension_numbers<[1], [0], [0], [1], [0, 0, 1, 1], [], []>} : vector<2x16xf32>, vector<16x256xf32>, vector<2x256xf32> -> vector<2x256xf32>
    %128 = arith.addf %123, %127 : vector<2x256xf32>
    %129 = vector.extract_strided_slice %14 {offsets = [46, 0], sizes = [2, 16], strides = [1, 1]} : vector<50x16xf32> to vector<2x16xf32>
    %c23 = arith.constant 23 : index
    %c0_76 = arith.constant 0 : index
    %c0_77 = arith.constant 0 : index
    %130 = vector.load %arg3[%c23, %c0_76, %c0_77] : memref<25x16x256xf32, #tpu.memory_space<vmem>>, vector<1x16x256xf32>
    %131 = vector.shape_cast %130 : vector<1x16x256xf32> to vector<16x256xf32>
    %cst_78 = arith.constant dense<0.000000e+00> : vector<2x256xf32>
    %132 = tpu.matmul %129, %131, %cst_78 {dimension_numbers = #tpu.dot_dimension_numbers<[1], [0], [0], [1], [0, 0, 1, 1], [], []>} : vector<2x16xf32>, vector<16x256xf32>, vector<2x256xf32> -> vector<2x256xf32>
    %133 = arith.addf %128, %132 : vector<2x256xf32>
    %134 = vector.extract_strided_slice %14 {offsets = [48, 0], sizes = [2, 16], strides = [1, 1]} : vector<50x16xf32> to vector<2x16xf32>
    %c24 = arith.constant 24 : index
    %c0_79 = arith.constant 0 : index
    %c0_80 = arith.constant 0 : index
    %135 = vector.load %arg3[%c24, %c0_79, %c0_80] : memref<25x16x256xf32, #tpu.memory_space<vmem>>, vector<1x16x256xf32>
    %136 = vector.shape_cast %135 : vector<1x16x256xf32> to vector<16x256xf32>
    %cst_81 = arith.constant dense<0.000000e+00> : vector<2x256xf32>
    %137 = tpu.matmul %134, %136, %cst_81 {dimension_numbers = #tpu.dot_dimension_numbers<[1], [0], [0], [1], [0, 0, 1, 1], [], []>} : vector<2x16xf32>, vector<16x256xf32>, vector<2x256xf32> -> vector<2x256xf32>
    %138 = arith.addf %133, %137 : vector<2x256xf32>
    %c0_82 = arith.constant 0 : index
    %c0_83 = arith.constant 0 : index
    %139 = vector.load %arg4[%c0_82, %c0_83] : memref<1x256xf32, #tpu.memory_space<vmem>>, vector<1x256xf32>
    %140 = vector.broadcast %139 : vector<1x256xf32> to vector<2x256xf32>
    %141 = arith.addf %138, %140 : vector<2x256xf32>
    %cst_84 = arith.constant 0.000000e+00 : f32
    %142 = vector.broadcast %cst_84 : f32 to vector<2x256xf32>
    %143 = arith.maximumf %141, %142 : vector<2x256xf32>
    %c0_85 = arith.constant 0 : index
    %c0_86 = arith.constant 0 : index
    %144 = vector.load %arg5[%c0_85, %c0_86] : memref<256x120xf32, #tpu.memory_space<vmem>>, vector<256x120xf32>
    %cst_87 = arith.constant dense<0.000000e+00> : vector<2x120xf32>
    %145 = tpu.matmul %143, %144, %cst_87 {dimension_numbers = #tpu.dot_dimension_numbers<[1], [0], [0], [1], [0, 0, 1, 1], [], []>} : vector<2x256xf32>, vector<256x120xf32>, vector<2x120xf32> -> vector<2x120xf32>
    %c0_88 = arith.constant 0 : index
    %c0_89 = arith.constant 0 : index
    %146 = vector.load %arg6[%c0_88, %c0_89] : memref<1x120xf32, #tpu.memory_space<vmem>>, vector<1x120xf32>
    %147 = vector.broadcast %146 : vector<1x120xf32> to vector<2x120xf32>
    %148 = arith.addf %145, %147 : vector<2x120xf32>
    %cst_90 = arith.constant 0.000000e+00 : f32
    %149 = vector.broadcast %cst_90 : f32 to vector<2x120xf32>
    %150 = arith.maximumf %148, %149 : vector<2x120xf32>
    %c0_91 = arith.constant 0 : index
    %c0_92 = arith.constant 0 : index
    %151 = vector.load %arg7[%c0_91, %c0_92] : memref<120x84xf32, #tpu.memory_space<vmem>>, vector<120x84xf32>
    %cst_93 = arith.constant dense<0.000000e+00> : vector<2x84xf32>
    %152 = tpu.matmul %150, %151, %cst_93 {dimension_numbers = #tpu.dot_dimension_numbers<[1], [0], [0], [1], [0, 0, 1, 1], [], []>} : vector<2x120xf32>, vector<120x84xf32>, vector<2x84xf32> -> vector<2x84xf32>
    %c0_94 = arith.constant 0 : index
    %c0_95 = arith.constant 0 : index
    %153 = vector.load %arg8[%c0_94, %c0_95] : memref<1x84xf32, #tpu.memory_space<vmem>>, vector<1x84xf32>
    %154 = vector.broadcast %153 : vector<1x84xf32> to vector<2x84xf32>
    %155 = arith.addf %152, %154 : vector<2x84xf32>
    %cst_96 = arith.constant 0.000000e+00 : f32
    %156 = vector.broadcast %cst_96 : f32 to vector<2x84xf32>
    %157 = arith.maximumf %155, %156 : vector<2x84xf32>
    %c0_97 = arith.constant 0 : index
    %c0_98 = arith.constant 0 : index
    %158 = vector.load %arg9[%c0_97, %c0_98] : memref<84x64xf32, #tpu.memory_space<vmem>>, vector<84x64xf32>
    %cst_99 = arith.constant dense<0.000000e+00> : vector<2x64xf32>
    %159 = tpu.matmul %157, %158, %cst_99 {dimension_numbers = #tpu.dot_dimension_numbers<[1], [0], [0], [1], [0, 0, 1, 1], [], []>} : vector<2x84xf32>, vector<84x64xf32>, vector<2x64xf32> -> vector<2x64xf32>
    %c0_100 = arith.constant 0 : index
    %c0_101 = arith.constant 0 : index
    %160 = vector.load %arg10[%c0_100, %c0_101] : memref<1x64xf32, #tpu.memory_space<vmem>>, vector<1x64xf32>
    %161 = vector.broadcast %160 : vector<1x64xf32> to vector<2x64xf32>
    %162 = arith.addf %159, %161 : vector<2x64xf32>
    %c0_102 = arith.constant 0 : index
    %c0_103 = arith.constant 0 : index
    %163 = vector.load %arg11[%c0_102, %c0_103] : memref<2x64xf32, #tpu.memory_space<vmem>>, vector<2x64xf32>
    tpu.vector_store %arg11[%c0_102, %c0_103], %162 {strides = array<i32>} : memref<2x64xf32, #tpu.memory_space<vmem>>, vector<2x64xf32>,
    return
  }
}

</mosaic_0001>

<bundles_post_ra>
// kernel: encoder_forward.2
= control target key start
LH: loop header
LB: loop body
LE: loop exit
PB: predicated region body
PF: predicated region fallthrough
CT: control target
= control target key end

     0   :  { %vm155_vm0 = vcmask 1042432   ;;  %v844_v3 = vmov 0.0   ;;  %vm151_vm1 = vcmask 613376   ;;  %vm845_vm2 = vmmov 0   ;;  %s848_s25 = smov 112   ;;  %s1335_s0 = inlined_call_operand.vmem [shape: f32[75,1568], index: 0, kind: input, shape index: {}]   ;;  %s1336_s1 = inlined_call_operand.vmem [shape: f32[6,75], index: 1, kind: input, shape index: {}]   ;;  %s1337_s2 = inlined_call_operand.vmem [shape: f32[6,1], index: 2, kind: input, shape index: {}]   ;;  %s1338_s3 = inlined_call_operand.vmem [shape: f32[6,392], index: 3, kind: output, shape index: {}]  }
   0x1   :  { %v133_v0 = vld [vmem:[%s1335_s0 + $0x3b0] sm:$0x7]  ;;  %v135_v1 = vld [vmem:[%s1335_s0 + $0x3c0] sm:$0x7]  ;;  %v132_v2 = vld [vmem:[%s1335_s0 + $0x3a8] sm:$0x7]  ;;  %259 = vmatprep.mubr.f32.mxu0 %v844_v3  ;;  %330 = vmatprep.mubr.f32.mxu1 %v844_v3 }
   0x2   :  { %784 = vmatprep.subr.msk.mxu0 %vm155_vm0, %v133_v0  ;;  %787 = vmatprep.subr.msk.mxu1 %vm155_vm0, %v135_v1  ;;  %v134_v4 = vld [vmem:[%s1335_s0 + $0x3b8] sm:$0x7]  ;;  %v120_v5 = vld [vmem:[%s1335_s0 + $0x348] sm:$0xff]  ;;  %v119_v7 = vld [vmem:[%s1335_s0 + $0x340] sm:$0xff]  ;;  %vm716_vm3 = vcmask 982016   ;;  %vm763_vm4 = vcmask 916480  }
   0x3   :  { %v122_v6 = vld [vmem:[%s1335_s0 + $0x358] sm:$0xff]  ;;  %785 = vmatpush1.msk.msra.mxu0 %vm155_vm0, %v132_v2  ;;  %788 = vmatpush1.msk.msra.mxu1 %vm155_vm0, %v134_v4  ;;  %v121_v8 = vld [vmem:[%s1335_s0 + $0x350] sm:$0xff]  ;;  %v107_v9 = vld [vmem:[%s1335_s0 + $0x2e0] sm:$0xff]  ;;  %vm778_vm5 = vcmask 62464  }
   0x4   :  { %209 = vmatprep.subr.mxu0 %v120_v5  ;;  %280 = vmatprep.subr.mxu1 %v122_v6  ;;  %v109_v10 = vld [vmem:[%s1335_s0 + $0x2f0] sm:$0xff]  ;;  %v106_v11 = vld [vmem:[%s1335_s0 + $0x2d8] sm:$0xff]  ;;  %v108_v12 = vld [vmem:[%s1335_s0 + $0x2e8] sm:$0xff] }
   0x5   :  { %210 = vmatpush1.msra.mxu0 %v119_v7  ;;  %281 = vmatpush1.msra.mxu1 %v121_v8  ;;  %v94_v13 = vld [vmem:[%s1335_s0 + $0x278] sm:$0xff]  ;;  %v96_v14 = vld [vmem:[%s1335_s0 + $0x288] sm:$0xff]  ;;  %v93_v15 = vld [vmem:[%s1335_s0 + $0x270] sm:$0xff] }
   0x6   :  { %211 = vmatprep.subr.mxu0 %v107_v9  ;;  %282 = vmatprep.subr.mxu1 %v109_v10  ;;  %v95_v16 = vld [vmem:[%s1335_s0 + $0x280] sm:$0xff]  ;;  %v81_v17 = vld [vmem:[%s1335_s0 + $0x210] sm:$0xff]  ;;  %v80_v19 = vld [vmem:[%s1335_s0 + $0x208] sm:$0xff] }
   0x7   :  { %212 = vmatpush1.msra.mxu0 %v106_v11  ;;  %283 = vmatpush1.msra.mxu1 %v108_v12  ;;  %v83_v18 = vld [vmem:[%s1335_s0 + $0x220] sm:$0xff]  ;;  %v82_v20 = vld [vmem:[%s1335_s0 + $0x218] sm:$0xff]  ;;  %v68_v21 = vld [vmem:[%s1335_s0 + $0x1a8] sm:$0xff] }
   0x8   :  { %213 = vmatprep.subr.mxu0 %v94_v13  ;;  %284 = vmatprep.subr.mxu1 %v96_v14  ;;  %v70_v22 = vld [vmem:[%s1335_s0 + $0x1b8] sm:$0xff]  ;;  %v67_v23 = vld [vmem:[%s1335_s0 + $0x1a0] sm:$0xff]  ;;  %v69_v24 = vld [vmem:[%s1335_s0 + $0x1b0] sm:$0xff] }
   0x9   :  { %214 = vmatpush1.msra.mxu0 %v93_v15  ;;  %285 = vmatpush1.msra.mxu1 %v95_v16  ;;  %v55_v25 = vld [vmem:[%s1335_s0 + $0x140] sm:$0xff]  ;;  %v57_v26 = vld [vmem:[%s1335_s0 + $0x150] sm:$0xff]  ;;  %v54_v27 = vld [vmem:[%s1335_s0 + $0x138] sm:$0xff] }
   0xa   :  { %215 = vmatprep.subr.mxu0 %v81_v17  ;;  %286 = vmatprep.subr.mxu1 %v83_v18  ;;  %v56_v28 = vld [vmem:[%s1335_s0 + $0x148] sm:$0xff]  ;;  %v42_v29 = vld [vmem:[%s1335_s0 + $0xd8] sm:$0xff]  ;;  %v41_v31 = vld [vmem:[%s1335_s0 + $0xd0] sm:$0xff] }
   0xb   :  { %216 = vmatpush1.msra.mxu0 %v80_v19  ;;  %287 = vmatpush1.msra.mxu1 %v82_v20  ;;  %v44_v30 = vld [vmem:[%s1335_s0 + $0xe8] sm:$0xff]  ;;  %v43_v32 = vld [vmem:[%s1335_s0 + $0xe0] sm:$0xff]  ;;  %v29_v33 = vld [vmem:[%s1335_s0 + $0x70] sm:$0xff] }
   0xc   :  { %217 = vmatprep.subr.mxu0 %v68_v21  ;;  %288 = vmatprep.subr.mxu1 %v70_v22  ;;  %v31_v34 = vld [vmem:[%s1335_s0 + $0x80] sm:$0xff]  ;;  %v28_v35 = vld [vmem:[%s1335_s0 + $0x68] sm:$0xff]  ;;  %v30_v36 = vld [vmem:[%s1335_s0 + $0x78] sm:$0xff] }
   0xd   :  { %218 = vmatpush1.msra.mxu0 %v67_v23  ;;  %289 = vmatpush1.msra.mxu1 %v69_v24  ;;  %v16_v37 = vld [vmem:[%s1335_s0 + $0x8] sm:$0xff]  ;;  %v18_v38 = vld [vmem:[%s1335_s0 + $0x18] sm:$0xff]  ;;  %v15_v39 = vld [vmem:[%s1335_s0] sm:$0xff] }
   0xe   :  { %219 = vmatprep.subr.mxu0 %v55_v25  ;;  %290 = vmatprep.subr.mxu1 %v57_v26  ;;  %v17_v40 = vld [vmem:[%s1335_s0 + $0x10] sm:$0xff]  ;;  %v998_v41 = vld [vmem:[%s1336_s1] sm:$0x3f]  ;;  %v136_v44 = vld [vmem:[%s1335_s0 + $0x3c8] sm:$0x7] }
   0xf   :  { %220 = vmatpush1.msra.mxu0 %v54_v27  ;;  %291 = vmatpush1.msra.mxu1 %v56_v28  ;;  %v137_v42 = vld [vmem:[%s1335_s0 + $0x3d0] sm:$0x7]  ;;  %v139_v43 = vld [vmem:[%s1335_s0 + $0x3e0] sm:$0x7]  ;;  %v138_v45 = vld [vmem:[%s1335_s0 + $0x3d8] sm:$0x7] }
  0x10   :  { %221 = vmatprep.subr.mxu0 %v42_v29  ;;  %292 = vmatprep.subr.mxu1 %v44_v30  ;;  %v124_v46 = vld [vmem:[%s1335_s0 + $0x368] sm:$0xff]  ;;  %v126_v47 = vld [vmem:[%s1335_s0 + $0x378] sm:$0xff]  ;;  %v123_v48 = vld [vmem:[%s1335_s0 + $0x360] sm:$0xff] }
  0x11   :  { %222 = vmatpush1.msra.mxu0 %v41_v31  ;;  %293 = vmatpush1.msra.mxu1 %v43_v32  ;;  %v125_v49 = vld [vmem:[%s1335_s0 + $0x370] sm:$0xff]  ;;  %v111_v50 = vld [vmem:[%s1335_s0 + $0x300] sm:$0xff]  ;;  %v110_v52 = vld [vmem:[%s1335_s0 + $0x2f8] sm:$0xff] }
  0x12   :  { %223 = vmatprep.subr.mxu0 %v29_v33  ;;  %294 = vmatprep.subr.mxu1 %v31_v34  ;;  %v113_v51 = vld [vmem:[%s1335_s0 + $0x310] sm:$0xff]  ;;  %v112_v53 = vld [vmem:[%s1335_s0 + $0x308] sm:$0xff]  ;;  %v98_v54 = vld [vmem:[%s1335_s0 + $0x298] sm:$0xff] }
  0x13   :  { %224 = vmatpush1.msra.mxu0 %v28_v35  ;;  %295 = vmatpush1.msra.mxu1 %v30_v36  ;;  %v100_v55 = vld [vmem:[%s1335_s0 + $0x2a8] sm:$0xff]  ;;  %v97_v56 = vld [vmem:[%s1335_s0 + $0x290] sm:$0xff]  ;;  %v99_v57 = vld [vmem:[%s1335_s0 + $0x2a0] sm:$0xff] }
  0x14   :  { %225 = vmatprep.subr.mxu0 %v16_v37  ;;  %296 = vmatprep.subr.mxu1 %v18_v38  ;;  %v85_v58 = vld [vmem:[%s1335_s0 + $0x230] sm:$0xff]  ;;  %v87_v59 = vld [vmem:[%s1335_s0 + $0x240] sm:$0xff]  ;;  %v84_v60 = vld [vmem:[%s1335_s0 + $0x228] sm:$0xff] }
  0x15   :  { %226 = vmatpush1.msra.mxu0 %v15_v39  ;;  %297 = vmatpush1.msra.mxu1 %v17_v40  ;;  %v86_v61 = vld [vmem:[%s1335_s0 + $0x238] sm:$0xff]  ;;  %v72_v62 = vld [vmem:[%s1335_s0 + $0x1c8] sm:$0xff]  ;;  %v71_v0 = vld [vmem:[%s1335_s0 + $0x1c0] sm:$0xff] }
  0x16   :  { %786 = vmatmul.mubr.msk.f32.vlgmr.msra.gmra.mxu0 %vm151_vm1, %v998_v41  ;;  %790 = vmatprep.subr.msk.mxu0 %vm155_vm0, %v137_v42  ;;  %v74_v63 = vld [vmem:[%s1335_s0 + $0x1d8] sm:$0xff]  ;;  %v73_v1 = vld [vmem:[%s1335_s0 + $0x1d0] sm:$0xff]  ;;  %v59_v2 = vld [vmem:[%s1335_s0 + $0x160] sm:$0xff] }
  0x17   :  { %793 = vmatprep.subr.msk.mxu1 %vm155_vm0, %v139_v43  ;;  %789 = vmatmul.mubr.msk.f32.vlgmr.msra.gmra.mxu1 %vm151_vm1, %v998_v41  ;;  %v61_v4 = vld [vmem:[%s1335_s0 + $0x170] sm:$0xff]  ;;  %v58_v5 = vld [vmem:[%s1335_s0 + $0x158] sm:$0xff]  ;;  %v60_v6 = vld [vmem:[%s1335_s0 + $0x168] sm:$0xff] }
  0x18   :  { %791 = vmatpush1.msk.msra.mxu0 %vm155_vm0, %v136_v44  ;;  %794 = vmatpush1.msk.msra.mxu1 %vm155_vm0, %v138_v45  ;;  %v46_v7 = vld [vmem:[%s1335_s0 + $0xf8] sm:$0xff]  ;;  %v48_v8 = vld [vmem:[%s1335_s0 + $0x108] sm:$0xff]  ;;  %v45_v9 = vld [vmem:[%s1335_s0 + $0xf0] sm:$0xff] }
  0x19   :  { %351 = vmatprep.subr.mxu0 %v124_v46  ;;  %422 = vmatprep.subr.mxu1 %v126_v47  ;;  %v47_v10 = vld [vmem:[%s1335_s0 + $0x100] sm:$0xff]  ;;  %v33_v11 = vld [vmem:[%s1335_s0 + $0x90] sm:$0xff]  ;;  %v32_v13 = vld [vmem:[%s1335_s0 + $0x88] sm:$0xff] }
  0x1a   :  { %352 = vmatpush1.msra.mxu0 %v123_v48  ;;  %423 = vmatpush1.msra.mxu1 %v125_v49  ;;  %v35_v12 = vld [vmem:[%s1335_s0 + $0xa0] sm:$0xff]  ;;  %v34_v14 = vld [vmem:[%s1335_s0 + $0x98] sm:$0xff]  ;;  %v20_v15 = vld [vmem:[%s1335_s0 + $0x28] sm:$0xff] }
  0x1b   :  { %353 = vmatprep.subr.mxu0 %v111_v50  ;;  %424 = vmatprep.subr.mxu1 %v113_v51  ;;  %v22_v16 = vld [vmem:[%s1335_s0 + $0x38] sm:$0xff]  ;;  %v19_v17 = vld [vmem:[%s1335_s0 + $0x20] sm:$0xff]  ;;  %v21_v18 = vld [vmem:[%s1335_s0 + $0x30] sm:$0xff] }
  0x1c   :  { %354 = vmatpush1.msra.mxu0 %v110_v52  ;;  %425 = vmatpush1.msra.mxu1 %v112_v53  ;;  %v141_v19 = vld [vmem:[%s1335_s0 + $0x3f0] sm:$0x7]  ;;  %v143_v20 = vld [vmem:[%s1335_s0 + $0x400] sm:$0x7]  ;;  %v140_v21 = vld [vmem:[%s1335_s0 + $0x3e8] sm:$0x7] }
  0x1d   :  { %355 = vmatprep.subr.mxu0 %v98_v54  ;;  %426 = vmatprep.subr.mxu1 %v100_v55  ;;  %v142_v22 = vld [vmem:[%s1335_s0 + $0x3f8] sm:$0x7]  ;;  %v128_v23 = vld [vmem:[%s1335_s0 + $0x388] sm:$0xff]  ;;  %v127_v25 = vld [vmem:[%s1335_s0 + $0x380] sm:$0xff] }
  0x1e   :  { %356 = vmatpush1.msra.mxu0 %v97_v56  ;;  %427 = vmatpush1.msra.mxu1 %v99_v57  ;;  %v130_v24 = vld [vmem:[%s1335_s0 + $0x398] sm:$0xff]  ;;  %v129_v26 = vld [vmem:[%s1335_s0 + $0x390] sm:$0xff]  ;;  %v115_v27 = vld [vmem:[%s1335_s0 + $0x320] sm:$0xff] }
  0x1f   :  { %357 = vmatprep.subr.mxu0 %v85_v58  ;;  %428 = vmatprep.subr.mxu1 %v87_v59  ;;  %v117_v28 = vld [vmem:[%s1335_s0 + $0x330] sm:$0xff]  ;;  %v114_v29 = vld [vmem:[%s1335_s0 + $0x318] sm:$0xff]  ;;  %v116_v30 = vld [vmem:[%s1335_s0 + $0x328] sm:$0xff] }
  0x20   :  { %358 = vmatpush1.msra.mxu0 %v84_v60  ;;  %429 = vmatpush1.msra.mxu1 %v86_v61  ;;  %v102_v31 = vld [vmem:[%s1335_s0 + $0x2b8] sm:$0xff]  ;;  %v104_v32 = vld [vmem:[%s1335_s0 + $0x2c8] sm:$0xff]  ;;  %v101_v33 = vld [vmem:[%s1335_s0 + $0x2b0] sm:$0xff] }
  0x21   :  { %359 = vmatprep.subr.mxu0 %v72_v62  ;;  %430 = vmatprep.subr.mxu1 %v74_v63  ;;  %v103_v34 = vld [vmem:[%s1335_s0 + $0x2c0] sm:$0xff]  ;;  %v89_v35 = vld [vmem:[%s1335_s0 + $0x250] sm:$0xff]  ;;  %v88_v37 = vld [vmem:[%s1335_s0 + $0x248] sm:$0xff]  ;;  %v846_v63 = vmov 0  }
  0x22   :  { %360 = vmatpush1.msra.mxu0 %v71_v0  ;;  %431 = vmatpush1.msra.mxu1 %v73_v1  ;;  %v91_v36 = vld [vmem:[%s1335_s0 + $0x260] sm:$0xff]  ;;  %v90_v38 = vld [vmem:[%s1335_s0 + $0x258] sm:$0xff]  ;;  %v76_v39 = vld [vmem:[%s1335_s0 + $0x1e8] sm:$0xff] }
  0x23   :  { %361 = vmatprep.subr.mxu0 %v59_v2  ;;  %432 = vmatprep.subr.mxu1 %v61_v4  ;;  %v78_v40 = vld [vmem:[%s1335_s0 + $0x1f8] sm:$0xff]  ;;  %v75_v42 = vld [vmem:[%s1335_s0 + $0x1e0] sm:$0xff]  ;;  %v77_v43 = vld [vmem:[%s1335_s0 + $0x1f0] sm:$0xff] }
  0x24   :  { %362 = vmatpush1.msra.mxu0 %v58_v5  ;;  %433 = vmatpush1.msra.mxu1 %v60_v6  ;;  %v63_v44 = vld [vmem:[%s1335_s0 + $0x180] sm:$0xff]  ;;  %v65_v45 = vld [vmem:[%s1335_s0 + $0x190] sm:$0xff]  ;;  %v62_v46 = vld [vmem:[%s1335_s0 + $0x178] sm:$0xff] }
  0x25   :  { %363 = vmatprep.subr.mxu0 %v46_v7  ;;  %434 = vmatprep.subr.mxu1 %v48_v8  ;;  %v64_v47 = vld [vmem:[%s1335_s0 + $0x188] sm:$0xff]  ;;  %v50_v48 = vld [vmem:[%s1335_s0 + $0x118] sm:$0xff]  ;;  %v49_v50 = vld [vmem:[%s1335_s0 + $0x110] sm:$0xff] }
  0x26   :  { %364 = vmatpush1.msra.mxu0 %v45_v9  ;;  %435 = vmatpush1.msra.mxu1 %v47_v10  ;;  %v52_v49 = vld [vmem:[%s1335_s0 + $0x128] sm:$0xff]  ;;  %v51_v51 = vld [vmem:[%s1335_s0 + $0x120] sm:$0xff]  ;;  %v37_v52 = vld [vmem:[%s1335_s0 + $0xb0] sm:$0xff] }
  0x27   :  { %365 = vmatprep.subr.mxu0 %v33_v11  ;;  %436 = vmatprep.subr.mxu1 %v35_v12  ;;  %v39_v53 = vld [vmem:[%s1335_s0 + $0xc0] sm:$0xff]  ;;  %v36_v54 = vld [vmem:[%s1335_s0 + $0xa8] sm:$0xff]  ;;  %v38_v55 = vld [vmem:[%s1335_s0 + $0xb8] sm:$0xff] }
  0x28   :  { %366 = vmatpush1.msra.mxu0 %v32_v13  ;;  %437 = vmatpush1.msra.mxu1 %v34_v14  ;;  %v24_v56 = vld [vmem:[%s1335_s0 + $0x48] sm:$0xff]  ;;  %v26_v57 = vld [vmem:[%s1335_s0 + $0x58] sm:$0xff]  ;;  %v23_v58 = vld [vmem:[%s1335_s0 + $0x40] sm:$0xff] }
  0x29   :  { %367 = vmatprep.subr.mxu0 %v20_v15  ;;  %438 = vmatprep.subr.mxu1 %v22_v16  ;;  %v25_v59 = vld [vmem:[%s1335_s0 + $0x50] sm:$0xff]  ;;  %v144_v60 = vld [vmem:[%s1335_s0 + $0x408] sm:$0x7]  ;;  %v145_v61 = vld [vmem:[%s1337_s2] sm:$0x3f] }
  0x2a   :  { %368 = vmatpush1.msra.mxu0 %v19_v17  ;;  %401 = vmatprep.mubr.f32.mxu0 %v844_v3  ;;  %v131_v62 = vld [vmem:[%s1335_s0 + $0x3a0] sm:$0xff]  ;;  %v118_v0 = vld [vmem:[%s1335_s0 + $0x338] sm:$0xff]  ;;  %v105_v1 = vld [vmem:[%s1335_s0 + $0x2d0] sm:$0xff] }
  0x2b   :  { %439 = vmatpush1.msra.mxu1 %v21_v18  ;;  %792 = vmatmul.mubr.msk.f32.vlgmr.msra.gmra.mxu0 %vm151_vm1, %v998_v41  ;;  %v92_v2 = vld [vmem:[%s1335_s0 + $0x268] sm:$0xff]  ;;  %v79_v4 = vld [vmem:[%s1335_s0 + $0x200] sm:$0xff]  ;;  %v66_v5 = vld [vmem:[%s1335_s0 + $0x198] sm:$0xff] }
  0x2c   :  { %472 = vmatprep.mubr.f32.mxu1 %v844_v3  ;;  %796 = vmatprep.subr.msk.mxu0 %vm155_vm0, %v141_v19  ;;  %v53_v6 = vld [vmem:[%s1335_s0 + $0x130] sm:$0xff]  ;;  %v40_v7 = vld [vmem:[%s1335_s0 + $0xc8] sm:$0xff]  ;;  %v27_v8 = vld [vmem:[%s1335_s0 + $0x60] sm:$0xff]  ;;  %s847_s0 = smov 120  }
  0x2d   :  { %799 = vmatprep.subr.msk.mxu1 %vm155_vm0, %v143_v20  ;;  %795 = vmatmul.mubr.msk.f32.vlgmr.msra.gmra.mxu1 %vm151_vm1, %v998_v41 }
  0x2e   :  { %797 = vmatpush1.msk.msra.mxu0 %vm155_vm0, %v140_v21  ;;  %800 = vmatpush1.msk.msra.mxu1 %vm155_vm0, %v142_v22 }
  0x2f   :  { %493 = vmatprep.subr.mxu0 %v128_v23  ;;  %564 = vmatprep.subr.mxu1 %v130_v24 }
  0x30   :  { %494 = vmatpush1.msra.mxu0 %v127_v25  ;;  %565 = vmatpush1.msra.mxu1 %v129_v26 }
  0x31   :  { %495 = vmatprep.subr.mxu0 %v115_v27  ;;  %566 = vmatprep.subr.mxu1 %v117_v28 }
  0x32   :  { %496 = vmatpush1.msra.mxu0 %v114_v29  ;;  %567 = vmatpush1.msra.mxu1 %v116_v30 }
  0x33   :  { %497 = vmatprep.subr.mxu0 %v102_v31  ;;  %568 = vmatprep.subr.mxu1 %v104_v32 }
  0x34   :  { %498 = vmatpush1.msra.mxu0 %v101_v33  ;;  %569 = vmatpush1.msra.mxu1 %v103_v34 }
  0x35   :  { %499 = vmatprep.subr.mxu0 %v89_v35  ;;  %570 = vmatprep.subr.mxu1 %v91_v36 }
  0x36   :  { %500 = vmatpush1.msra.mxu0 %v88_v37  ;;  %571 = vmatpush1.msra.mxu1 %v90_v38 }
  0x37   :  { %501 = vmatprep.subr.mxu0 %v76_v39  ;;  %572 = vmatprep.subr.mxu1 %v78_v40 }
  0x38   :  { %502 = vmatpush1.msra.mxu0 %v75_v42  ;;  %573 = vmatpush1.msra.mxu1 %v77_v43 }
  0x39   :  { %503 = vmatprep.subr.mxu0 %v63_v44  ;;  %574 = vmatprep.subr.mxu1 %v65_v45 }
  0x3a   :  { %504 = vmatpush1.msra.mxu0 %v62_v46  ;;  %575 = vmatpush1.msra.mxu1 %v64_v47 }
  0x3b   :  { %505 = vmatprep.subr.mxu0 %v50_v48  ;;  %576 = vmatprep.subr.mxu1 %v52_v49 }
  0x3c   :  { %506 = vmatpush1.msra.mxu0 %v49_v50  ;;  %577 = vmatpush1.msra.mxu1 %v51_v51 }
  0x3d   :  { %507 = vmatprep.subr.mxu0 %v37_v52  ;;  %578 = vmatprep.subr.mxu1 %v39_v53 }
  0x3e   :  { %508 = vmatpush1.msra.mxu0 %v36_v54  ;;  %579 = vmatpush1.msra.mxu1 %v38_v55 }
  0x3f   :  { %509 = vmatprep.subr.mxu0 %v24_v56  ;;  %580 = vmatprep.subr.mxu1 %v26_v57 }
  0x40   :  { %510 = vmatpush1.msra.mxu0 %v23_v58  ;;  %543 = vmatprep.mubr.f32.mxu0 %v844_v3 }
  0x41   :  { %581 = vmatpush1.msra.mxu1 %v25_v59  ;;  %614 = vmatprep.mubr.f32.mxu1 %v844_v3 }
  0x42   :  { %798 = vmatmul.mubr.msk.f32.vlgmr.msra.gmra.mxu0 %vm151_vm1, %v998_v41  ;;  %801 = vmatmul.mubr.msk.f32.vlgmr.msra.gmra.mxu1 %vm151_vm1, %v998_v41 }
  0x43   :  { %815 = vmatprep.subr.mxu0 %v844_v3  ;;  %835 = vmatprep.mubr.msk.f32.mxu0 %vm845_vm2, %v844_v3 }
  0x44   :  { %816 = vmatpush3.msk.msra.mxu0 %vm155_vm0, %v144_v60  ;;  %843 = vset.pattern.permute.xlu0 %v846_v63 }
  0x45   :  { %817 = vmatprep.subr.mxu0 %v844_v3  ;;  %148 = vperm.xlu0 %843, %v145_v61  }
  0x46   :  { %818 = vmatpush3.msra.mxu0 %v131_v62 }
  0x47   :  { %819 = vmatprep.subr.mxu0 %v844_v3 }
  0x48   :  { %820 = vmatpush3.msra.mxu0 %v118_v0 }
  0x49   :  { %821 = vmatprep.subr.mxu0 %v844_v3 }
  0x4a   :  { %822 = vmatpush3.msra.mxu0 %v105_v1 }
  0x4b   :  { %823 = vmatprep.subr.mxu0 %v844_v3 }
  0x4c   :  { %824 = vmatpush3.msra.mxu0 %v92_v2 }
  0x4d   :  { %825 = vmatprep.subr.mxu0 %v844_v3 }
  0x4e   :  { %826 = vmatpush3.msra.mxu0 %v79_v4 }
  0x4f   :  { %827 = vmatprep.subr.mxu0 %v844_v3 }
  0x50   :  { %828 = vmatpush3.msra.mxu0 %v66_v5 }
  0x51   :  { %829 = vmatprep.subr.mxu0 %v844_v3 }
  0x52   :  { %830 = vmatpush3.msra.mxu0 %v53_v6 }
  0x53   :  { %831 = vmatprep.subr.mxu0 %v844_v3 }
  0x54   :  { %832 = vmatpush3.msra.mxu0 %v40_v7 }
  0x55   :  { %833 = vmatprep.subr.mxu0 %v844_v3 }
  0x56   :  { %834 = vmatpush3.msra.mxu0 %v27_v8 }
  0x57   :  { %836 = vmatmul.mubr.msk.f32.vlgmr.msra.gmra.mxu0 %vm151_vm1, %v998_v41 }
  0xc0   :  { %v149_v17 = vpop.permute.xlu0 %148 }
  0xd6   :  { %v261_v9 = vpop.f32.mrf.mxu0 }
  0xd7   :  { %v1311_v10 = vpop.f32.mrf.mxu1  ;;  %v262_v53 = vadd.f32 %v261_v9, %v149_v17 }
  0xd8   :  { %v263_v11 = vpop.f32.mrf.mxu0  ;;  %v333_v58 = vadd.f32 %v1311_v10, %v149_v17 }
  0xd9   :  { %v334_v12 = vpop.f32.mrf.mxu1  ;;  %v264_v50 = vadd.f32 %v263_v11, %v149_v17  ;;  %v691_v61 = vmax.f32 %v262_v53, 0.0 }
  0xda   :  { %v1313_v26 = vadd.f32 %v334_v12, %v149_v17  ;;  %v693_v2 = vmax.f32 %v333_v58, 0.0 }
  0xdb   :  { %v692_v57 = vmax.f32 %v264_v50, 0.0 }
  0xdc   :  { %v694_v27 = vmax.f32 %v1313_v26, 0.0 }
  0xeb   :  { %v403_v13 = vpop.f32.mrf.mxu0 }
  0xec   :  { %v404_v33 = vadd.f32 %v403_v13, %v149_v17 }
  0xed   :  { %v474_v14 = vpop.f32.mrf.mxu1  ;;  %v405_v15 = vpop.f32.mrf.mxu0 }
  0xee   :  { %v406_v28 = vadd.f32 %v405_v15, %v149_v17  ;;  %v695_v35 = vmax.f32 %v404_v33, 0.0  ;;  %v475_v36 = vadd.f32 %v474_v14, %v149_v17 }
  0xef   :  { %v476_v16 = vpop.f32.mrf.mxu1 }
  0xf0   :  { %v696_v29 = vmax.f32 %v406_v28, 0.0  ;;  %v697_v37 = vmax.f32 %v475_v36, 0.0  ;;  %v477_v38 = vadd.f32 %v476_v16, %v149_v17 }
  0xf2   :  { %v698_v43 = vmax.f32 %v477_v38, 0.0 }
 0x102   :  { %v545_v18 = vpop.f32.mrf.mxu0  ;;  %v616_v19 = vpop.f32.mrf.mxu1 }
 0x103   :  { %v617_v20 = vadd.f32 %v616_v19, %v149_v17  ;;  %v546_v48 = vadd.f32 %v545_v18, %v149_v17 }
 0x104   :  { %v547_v21 = vpop.f32.mrf.mxu0  ;;  %v618_v22 = vpop.f32.mrf.mxu1 }
 0x105   :  { %v701_v3 = vmax.f32 %v617_v20, 0.0  ;;  %v548_v23 = vadd.f32 %v547_v21, %v149_v17  ;;  %v619_v24 = vadd.f32 %v618_v22, %v149_v17  ;;  %v699_v51 = vmax.f32 %v546_v48, 0.0 }
 0x107   :  { %v700_v25 = vmax.f32 %v548_v23, 0.0  ;;  %v702_v41 = vmax.f32 %v619_v24, 0.0  ;;  %734 = vrot.lane.b32.xlu1 %v701_v3, %s847_s0 }
 0x109   :  { %732 = vrot.lane.b32.xlu0 %v700_v25, %s847_s0 }
 0x10b   :  { %736 = vrot.lane.b32.xlu1 %v702_v41, %s847_s0 }
 0x10f   :  { %708 = vrot.lane.b32.xlu1 %v694_v27, %s847_s0 }
 0x113   :  { %712 = vrot.lane.b32.xlu1 %v696_v29, %s847_s0 }
 0x117   :  { %v687_v30 = vpop.f32.mrf.mxu0 }
 0x118   :  { %v688_v31 = vadd.f32 %v687_v30, %v149_v17 }
 0x119   :  { %v837_v32 = vpop.f32.mrf.mxu0 }
 0x11a   :  { %v703_v34 = vmax.f32 %v688_v31, 0.0 }
 0x11c   :  { %738 = vrot.lane.b32.xlu0 %v703_v34, %s847_s0 }
 0x120   :  { %710 = vrot.lane.b32.xlu0 %v695_v35, %s847_s0 }
 0x124   :  { %714 = vrot.lane.b32.xlu0 %v697_v37, %s847_s0 }
 0x179   :  { %v735_v39 = vpop.permute.xlu1 %734 }
 0x17b   :  { %v733_v40 = vpop.permute.xlu0 %732 }
 0x17c   :  { %v740_v42 = vsel %vm716_vm3, %v733_v40, %v735_v39 }
 0x17d   :  { %v747_v44 = vmax.f32 %v697_v37, %v740_v42  ;;  %v737_v45 = vpop.permute.xlu1 %736 }
 0x17e   :  { %v741_v46 = vsel %vm716_vm3, %v735_v39, %v737_v45 }
 0x17f   :  { %v748_v47 = vmax.f32 %v698_v43, %v741_v46  ;;  %755 = vrot.lane.b32.xlu1 %v747_v44, %s848_s25 }
 0x181   :  { %757 = vrot.lane.b32.xlu0 %v748_v47, %s848_s25  ;;  %v709_v49 = vpop.permute.xlu1 %708 }
 0x185   :  { %v713_v59 = vpop.permute.xlu1 %712 }
 0x18e   :  { %v739_v52 = vpop.permute.xlu0 %738 }
 0x18f   :  { %v742_v54 = vsel %vm716_vm3, %v737_v45, %v739_v52  ;;  %v750_v55 = vmax.f32 %v700_v25, %v739_v52 }
 0x190   :  { %v749_v56 = vmax.f32 %v699_v51, %v742_v54 }
 0x191   :  { %761 = vrot.lane.b32.xlu0 %v750_v55, %s848_s25 }
 0x192   :  { %759 = vrot.lane.b32.xlu1 %v749_v56, %s848_s25  ;;  %v711_v60 = vpop.permute.xlu0 %710 }
 0x193   :  { %v717_v62 = vsel %vm716_vm3, %v709_v49, %v711_v60  ;;  %v718_v63 = vsel %vm716_vm3, %v711_v60, %v713_v59 }
 0x194   :  { %v724_v0 = vmax.f32 %v691_v61, %v717_v62  ;;  %v725_v1 = vmax.f32 %v692_v57, %v718_v63 }
 0x196   :  { %v715_v4 = vpop.permute.xlu0 %714 }
 0x197   :  { %v719_v5 = vsel %vm716_vm3, %v713_v59, %v715_v4  ;;  %v727_v11 = vmax.f32 %v694_v27, %v715_v4 }
 0x198   :  { %v726_v6 = vmax.f32 %v693_v2, %v719_v5 }
 0x1f1   :  { %v756_v7 = vpop.permute.xlu1 %755 }
 0x1f3   :  { %v758_v8 = vpop.permute.xlu0 %757 }
 0x1f4   :  { %v764_v9 = vsel %vm763_vm4, %v756_v7, %v758_v8 }
 0x1f5   :  { %v771_v10 = vmax.f32 %v724_v0, %v764_v9 }
 0x1f7   :  { %775 = vst [vmem:[%s1338_s3] sm:$0x3f] %v771_v10 }
 0x203   :  { %v762_v12 = vpop.permute.xlu0 %761 }
 0x204   :  { %v774_v13 = vmax.f32 %v727_v11, %v762_v12  ;;  %v760_v14 = vpop.permute.xlu1 %759 }
 0x205   :  { %v765_v15 = vsel %vm763_vm4, %v758_v8, %v760_v14  ;;  %v766_v16 = vsel %vm763_vm4, %v760_v14, %v762_v12 }
 0x206   :  { %779 = vst.msk [vmem:[%s1338_s3 + $0x18] sm:$0x3f] %vm778_vm5, %v774_v13  ;;  %v772_v17 = vmax.f32 %v725_v1, %v765_v15  ;;  %v773_v18 = vmax.f32 %v726_v6, %v766_v16 }
 0x208   :  { %776 = vst [vmem:[%s1338_s3 + $0x8] sm:$0x3f] %v772_v17  ;;  %777 = vst [vmem:[%s1338_s3 + $0x10] sm:$0x3f] %v773_v18 }

// kernel: encoder_forward.3
= control target key start
LH: loop header
LB: loop body
LE: loop exit
PB: predicated region body
PF: predicated region fallthrough
CT: control target
= control target key end

     0   :  { %v3168_v1 = vmov 0.0   ;;  %vm115_vm0 = vcmask 179200   ;;  %s4182_s0 = inlined_call_operand.vmem [shape: f32[200,150], index: 0, kind: input, shape index: {}]   ;;  %s4183_s1 = inlined_call_operand.vmem [shape: f32[150,16], index: 1, kind: input, shape index: {}]   ;;  %s4184_s2 = inlined_call_operand.vmem [shape: f32[1,16], index: 2, kind: input, shape index: {}]   ;;  %s4185_s3 = inlined_call_operand.vmem [shape: f32[25,16,256], index: 3, kind: input, shape index: {}]   ;;  %s4186_s4 = inlined_call_operand.vmem [shape: f32[1,256], index: 4, kind: input, shape index: {}]   ;;  %s4187_s5 = inlined_call_operand.vmem [shape: f32[256,120], index: 5, kind: input, shape index: {}]   ;;  %s4188_s6 = inlined_call_operand.vmem [shape: f32[1,120], index: 6, kind: input, shape index: {}]   ;;  %s4189_s7 = inlined_call_operand.vmem [shape: f32[120,84], index: 7, kind: input, shape index: {}]   ;;  %s4190_s8 = inlined_call_operand.vmem [shape: f32[1,84], index: 8, kind: input, shape index: {}]   ;;  %s4191_s9 = inlined_call_operand.vmem [shape: f32[84,64], index: 9, kind: input, shape index: {}]   ;;  %s4192_s10 = inlined_call_operand.vmem [shape: f32[1,64], index: 10, kind: input, shape index: {}]   ;;  %s4193_s11 = inlined_call_operand.hbm [shape: f32[2,64], index: 11, kind: output, shape index: {}]  }
   0x1   :  { %v104_v0 = vld [vmem:[%s4183_s1 + $0x78] sm:$0xff]  ;;  %195 = vmatprep.subr.mxu0 %v3168_v1  ;;  %v103_v2 = vld [vmem:[%s4183_s1 + $0x70] sm:$0xff]  ;;  %591 = vmatprep.mubr.f32.mxu1 %v3168_v1  ;;  %v102_v3 = vld [vmem:[%s4183_s1 + $0x68] sm:$0xff] }
   0x2   :  { %196 = vmatpush1.msra.mxu0 %v104_v0  ;;  %v101_v4 = vld [vmem:[%s4183_s1 + $0x60] sm:$0xff]  ;;  %v40_v5 = vld [vmem:[%s4182_s0 + $0x8] sm:$0xff]  ;;  %v100_v6 = vld [vmem:[%s4183_s1 + $0x58] sm:$0xff] }
   0x3   :  { %197 = vmatprep.subr.mxu0 %v3168_v1  ;;  %2870 = vmatprep.mubr.msk.f32.mxu0 %vm115_vm0, %v40_v5  ;;  %v99_v7 = vld [vmem:[%s4183_s1 + $0x50] sm:$0xff]  ;;  %v98_v8 = vld [vmem:[%s4183_s1 + $0x48] sm:$0xff]  ;;  %v97_v9 = vld [vmem:[%s4183_s1 + $0x40] sm:$0xff] }
   0x4   :  { %198 = vmatpush1.msra.mxu0 %v103_v2  ;;  %v96_v10 = vld [vmem:[%s4183_s1 + $0x38] sm:$0xff]  ;;  %v95_v11 = vld [vmem:[%s4183_s1 + $0x30] sm:$0xff]  ;;  %v94_v12 = vld [vmem:[%s4183_s1 + $0x28] sm:$0xff] }
   0x5   :  { %199 = vmatprep.subr.mxu0 %v3168_v1  ;;  %v93_v13 = vld [vmem:[%s4183_s1 + $0x20] sm:$0xff]  ;;  %v92_v14 = vld [vmem:[%s4183_s1 + $0x18] sm:$0xff] }
   0x6   :  { %200 = vmatpush1.msra.mxu0 %v102_v3 }
   0x7   :  { %201 = vmatprep.subr.mxu0 %v3168_v1 }
   0x8   :  { %202 = vmatpush1.msra.mxu0 %v101_v4 }
   0x9   :  { %203 = vmatprep.subr.mxu0 %v3168_v1 }
   0xa   :  { %204 = vmatpush1.msra.mxu0 %v100_v6 }
   0xb   :  { %205 = vmatprep.subr.mxu0 %v3168_v1 }
   0xc   :  { %206 = vmatpush1.msra.mxu0 %v99_v7 }
   0xd   :  { %207 = vmatprep.subr.mxu0 %v3168_v1 }
   0xe   :  { %208 = vmatpush1.msra.mxu0 %v98_v8 }
   0xf   :  { %209 = vmatprep.subr.mxu0 %v3168_v1 }
  0x10   :  { %210 = vmatpush1.msra.mxu0 %v97_v9 }
  0x11   :  { %211 = vmatprep.subr.mxu0 %v3168_v1 }
  0x12   :  { %212 = vmatpush1.msra.mxu0 %v96_v10 }
  0x13   :  { %213 = vmatprep.subr.mxu0 %v3168_v1 }
  0x14   :  { %214 = vmatpush1.msra.mxu0 %v95_v11 }
  0x15   :  { %215 = vmatprep.subr.mxu0 %v3168_v1 }
  0x16   :  { %216 = vmatpush1.msra.mxu0 %v94_v12 }
  0x17   :  { %217 = vmatprep.subr.mxu0 %v3168_v1 }
  0x18   :  { %16 = vsyncpa [#allocation3], 0  ;;  %218 = vmatpush1.msra.mxu0 %v93_v13  ;;  %v91_v15 = vld [vmem:[%s4183_s1 + $0x10] sm:$0xff]  ;;  %v90_v16 = vld [vmem:[%s4183_s1 + $0x8] sm:$0xff]  ;;  %vm191_vm1 = vcmask 1045504   ;;  %vm485_vm2 = vcmask 1043456  }
  0x19   :  { %219 = vmatprep.subr.mxu0 %v3168_v1  ;;  %v89_v17 = vld [vmem:[%s4183_s1] sm:$0xff]  ;;  %v107_v18 = vld [vmem:[%s4183_s1 + $0x90] sm:$0x3f]  ;;  %v106_v19 = vld [vmem:[%s4183_s1 + $0x88] sm:$0xff]  ;;  %vm524_vm3 = vcmask 130048   ;;  %vm3169_vm4 = vmmov 0  }
  0x1a   :  { %220 = vmatpush1.msra.mxu0 %v92_v14  ;;  %v105_v20 = vld [vmem:[%s4183_s1 + $0x80] sm:$0xff]  ;;  %v42_v22 = vld [vmem:[%s4182_s0 + $0x18] sm:$0xff]  ;;  %v41_v23 = vld [vmem:[%s4182_s0 + $0x10] sm:$0xff]  ;;  %vm2682_vm5 = vcmask 982016   ;;  %vm2775_vm6 = vcmask 687104   ;;  %s3170_s23 = smov [#allocation2]  }
  0x1b   :  { %221 = vmatprep.subr.mxu0 %v3168_v1  ;;  %v39_v21 = vld [vmem:[%s4182_s0] sm:$0xff]  ;;  %v44_v24 = vld [vmem:[%s4182_s0 + $0x28] sm:$0xff]  ;;  %v46_v26 = vld [vmem:[%s4182_s0 + $0x38] sm:$0xff]  ;;  %s2860_s24 = sshll.u32 %s3170_s23, 4  ;;  %vm2852_vm7 = vcmask 517120   ;;  %s2861_s24 = int_to_ptr.vmem [resolvable:$true] %s2860_s24 }
  0x1c   :  { %222 = vmatpush1.msra.mxu0 %v91_v15  ;;  %v43_v25 = vld [vmem:[%s4182_s0 + $0x20] sm:$0xff]  ;;  %v45_v27 = vld [vmem:[%s4182_s0 + $0x30] sm:$0xff]  ;;  %v48_v28 = vld [vmem:[%s4182_s0 + $0x48] sm:$0xff]  ;;  %p3151_p1 = scmp.lt.s32.totalorder %s2861_s24, %s2861_s24 }
  0x1d   :  { %223 = vmatprep.subr.mxu0 %v3168_v1  ;;  %v47_v29 = vld [vmem:[%s4182_s0 + $0x40] sm:$0xff]  ;;  %v50_v30 = vld [vmem:[%s4182_s0 + $0x58] sm:$0xff]  ;;  %v49_v31 = vld [vmem:[%s4182_s0 + $0x50] sm:$0xff] }
  0x1e   :  { %224 = vmatpush1.msra.mxu0 %v90_v16  ;;  %v52_v32 = vld [vmem:[%s4182_s0 + $0x68] sm:$0xff]  ;;  %v51_v33 = vld [vmem:[%s4182_s0 + $0x60] sm:$0xff]  ;;  %v54_v34 = vld [vmem:[%s4182_s0 + $0x78] sm:$0xff] }
  0x1f   :  { %225 = vmatprep.subr.mxu0 %v3168_v1  ;;  %v53_v35 = vld [vmem:[%s4182_s0 + $0x70] sm:$0xff]  ;;  %v56_v36 = vld [vmem:[%s4182_s0 + $0x88] sm:$0xff]  ;;  %v55_v37 = vld [vmem:[%s4182_s0 + $0x80] sm:$0xff] }
  0x20   :  { %226 = vmatpush1.msra.mxu0 %v89_v17  ;;  %v58_v38 = vld [vmem:[%s4182_s0 + $0x98] sm:$0xff]  ;;  %v57_v39 = vld [vmem:[%s4182_s0 + $0x90] sm:$0xff]  ;;  %v60_v40 = vld [vmem:[%s4182_s0 + $0xa8] sm:$0xff] }
  0x21   :  { %253 = vmatprep.subr.mxu0 %v3168_v1  ;;  %v59_v41 = vld [vmem:[%s4182_s0 + $0xa0] sm:$0xff]  ;;  %v62_v42 = vld [vmem:[%s4182_s0 + $0xb8] sm:$0xff]  ;;  %v61_v43 = vld [vmem:[%s4182_s0 + $0xb0] sm:$0xff] }
  0x22   :  { %2869 = vmatpush2.msk.msra.mxu0 %vm191_vm1, %v107_v18  ;;  %v64_v44 = vld [vmem:[%s4182_s0 + $0xc8] sm:$0xff]  ;;  %v63_v45 = vld [vmem:[%s4182_s0 + $0xc0] sm:$0xff]  ;;  %v66_v46 = vld [vmem:[%s4182_s0 + $0xd8] sm:$0xff] }
  0x23   :  { %255 = vmatprep.subr.mxu0 %v3168_v1  ;;  %v65_v47 = vld [vmem:[%s4182_s0 + $0xd0] sm:$0xff]  ;;  %v68_v48 = vld [vmem:[%s4182_s0 + $0xe8] sm:$0xff]  ;;  %v67_v49 = vld [vmem:[%s4182_s0 + $0xe0] sm:$0xff] }
  0x24   :  { %256 = vmatpush2.msra.mxu0 %v106_v19  ;;  %v70_v50 = vld [vmem:[%s4182_s0 + $0xf8] sm:$0xff]  ;;  %v69_v51 = vld [vmem:[%s4182_s0 + $0xf0] sm:$0xff]  ;;  %v72_v52 = vld [vmem:[%s4182_s0 + $0x108] sm:$0xff] }
  0x25   :  { %257 = vmatprep.subr.mxu0 %v3168_v1  ;;  %v71_v53 = vld [vmem:[%s4182_s0 + $0x100] sm:$0xff]  ;;  %v74_v54 = vld [vmem:[%s4182_s0 + $0x118] sm:$0xff]  ;;  %v73_v55 = vld [vmem:[%s4182_s0 + $0x110] sm:$0xff] }
  0x26   :  { %258 = vmatpush2.msra.mxu0 %v105_v20  ;;  %v76_v56 = vld [vmem:[%s4182_s0 + $0x128] sm:$0xff]  ;;  %v75_v57 = vld [vmem:[%s4182_s0 + $0x120] sm:$0xff]  ;;  %v78_v58 = vld [vmem:[%s4182_s0 + $0x138] sm:$0xff] }
  0x27   :  { %260 = vmatmul.mubr.f32.vlgmr.msra.gmra.mxu0 %v39_v21  ;;  %3085 = vmatprep.subr.mxu0 %v3168_v1  ;;  %v77_v59 = vld [vmem:[%s4182_s0 + $0x130] sm:$0xff]  ;;  %v80_v60 = vld [vmem:[%s4182_s0 + $0x148] sm:$0xff]  ;;  %v79_v61 = vld [vmem:[%s4182_s0 + $0x140] sm:$0xff] }
  0x28   :  { %2871 = vmatprep.mubr.msk.f32.mxu0 %vm115_vm0, %v42_v22  ;;  %v82_v62 = vld [vmem:[%s4182_s0 + $0x158] sm:$0xff]  ;;  %v81_v63 = vld [vmem:[%s4182_s0 + $0x150] sm:$0xff]  ;;  %v84_v0 = vld [vmem:[%s4182_s0 + $0x168] sm:$0xff] }
  0x29   :  { %v83_v2 = vld [vmem:[%s4182_s0 + $0x160] sm:$0xff]  ;;  %v86_v3 = vld [vmem:[%s4182_s0 + $0x178] sm:$0xff]  ;;  %v85_v4 = vld [vmem:[%s4182_s0 + $0x170] sm:$0xff] }
  0x2a   :  { %v88_v5 = vld [vmem:[%s4182_s0 + $0x188] sm:$0xff]  ;;  %v87_v6 = vld [vmem:[%s4182_s0 + $0x180] sm:$0xff]  ;;  %v2898_v7 = vld [vmem:[%s4185_s3 + $0x38] sm:$0xff] }
  0x2b   :  { %265 = vmatmul.mubr.f32.gmra.mxu0 %v41_v23  ;;  %555 = vmatprep.subr.mxu1 %v2898_v7  ;;  %v2897_v8 = vld [vmem:[%s4185_s3 + $0x30] sm:$0xff]  ;;  %v2896_v9 = vld [vmem:[%s4185_s3 + $0x28] sm:$0xff]  ;;  %v2895_v10 = vld [vmem:[%s4185_s3 + $0x20] sm:$0xff] }
  0x2c   :  { %2872 = vmatprep.mubr.msk.f32.mxu0 %vm115_vm0, %v44_v24  ;;  %556 = vmatpush1.msra.mxu1 %v2897_v8  ;;  %v516_v11 = vld [vmem:[%s4185_s3 + $0x18] sm:$0xff] }
  0x2d   :  { %557 = vmatprep.subr.mxu1 %v2896_v9 }
  0x2e   :  { %558 = vmatpush1.msra.mxu1 %v2895_v10 }
  0x2f   :  { %270 = vmatmul.mubr.f32.gmra.mxu0 %v43_v25  ;;  %628 = vmatprep.subr.mxu1 %v516_v11 }
  0x30   :  { %2873 = vmatprep.mubr.msk.f32.mxu0 %vm115_vm0, %v46_v26  ;;  %v3505_v26 = vld [vmem:[%s4184_s2] ss:$0 sm:$0xff] }
  0x33   :  { %275 = vmatmul.mubr.f32.gmra.mxu0 %v45_v27 }
  0x34   :  { %2874 = vmatprep.mubr.msk.f32.mxu0 %vm115_vm0, %v48_v28 }
  0x37   :  { %280 = vmatmul.mubr.f32.gmra.mxu0 %v47_v29 }
  0x38   :  { %2875 = vmatprep.mubr.msk.f32.mxu0 %vm115_vm0, %v50_v30 }
  0x3b   :  { %285 = vmatmul.mubr.f32.gmra.mxu0 %v49_v31 }
  0x3c   :  { %2876 = vmatprep.mubr.msk.f32.mxu0 %vm115_vm0, %v52_v32 }
  0x3f   :  { %290 = vmatmul.mubr.f32.gmra.mxu0 %v51_v33 }
  0x40   :  { %2877 = vmatprep.mubr.msk.f32.mxu0 %vm115_vm0, %v54_v34 }
  0x43   :  { %295 = vmatmul.mubr.f32.gmra.mxu0 %v53_v35 }
  0x44   :  { %2878 = vmatprep.mubr.msk.f32.mxu0 %vm115_vm0, %v56_v36 }
  0x47   :  { %300 = vmatmul.mubr.f32.gmra.mxu0 %v55_v37 }
  0x48   :  { %2879 = vmatprep.mubr.msk.f32.mxu0 %vm115_vm0, %v58_v38 }
  0x4b   :  { %305 = vmatmul.mubr.f32.gmra.mxu0 %v57_v39 }
  0x4c   :  { %2880 = vmatprep.mubr.msk.f32.mxu0 %vm115_vm0, %v60_v40 }
  0x4f   :  { %310 = vmatmul.mubr.f32.gmra.mxu0 %v59_v41 }
  0x50   :  { %2881 = vmatprep.mubr.msk.f32.mxu0 %vm115_vm0, %v62_v42 }
  0x53   :  { %315 = vmatmul.mubr.f32.gmra.mxu0 %v61_v43 }
  0x54   :  { %2882 = vmatprep.mubr.msk.f32.mxu0 %vm115_vm0, %v64_v44 }
  0x57   :  { %320 = vmatmul.mubr.f32.gmra.mxu0 %v63_v45 }
  0x58   :  { %2883 = vmatprep.mubr.msk.f32.mxu0 %vm115_vm0, %v66_v46 }
  0x5b   :  { %325 = vmatmul.mubr.f32.gmra.mxu0 %v65_v47 }
  0x5c   :  { %2884 = vmatprep.mubr.msk.f32.mxu0 %vm115_vm0, %v68_v48 }
  0x5f   :  { %330 = vmatmul.mubr.f32.gmra.mxu0 %v67_v49 }
  0x60   :  { %2885 = vmatprep.mubr.msk.f32.mxu0 %vm115_vm0, %v70_v50 }
  0x63   :  { %335 = vmatmul.mubr.f32.gmra.mxu0 %v69_v51 }
  0x64   :  { %2886 = vmatprep.mubr.msk.f32.mxu0 %vm115_vm0, %v72_v52 }
  0x67   :  { %340 = vmatmul.mubr.f32.gmra.mxu0 %v71_v53 }
  0x68   :  { %2887 = vmatprep.mubr.msk.f32.mxu0 %vm115_vm0, %v74_v54 }
  0x6b   :  { %345 = vmatmul.mubr.f32.gmra.mxu0 %v73_v55 }
  0x6c   :  { %2888 = vmatprep.mubr.msk.f32.mxu0 %vm115_vm0, %v76_v56 }
  0x6f   :  { %350 = vmatmul.mubr.f32.gmra.mxu0 %v75_v57 }
  0x70   :  { %2889 = vmatprep.mubr.msk.f32.mxu0 %vm115_vm0, %v78_v58 }
  0x73   :  { %355 = vmatmul.mubr.f32.gmra.mxu0 %v77_v59 }
  0x74   :  { %2890 = vmatprep.mubr.msk.f32.mxu0 %vm115_vm0, %v80_v60 }
  0x77   :  { %360 = vmatmul.mubr.f32.gmra.mxu0 %v79_v61 }
  0x78   :  { %2891 = vmatprep.mubr.msk.f32.mxu0 %vm115_vm0, %v82_v62 }
  0x7b   :  { %365 = vmatmul.mubr.f32.gmra.mxu0 %v81_v63 }
  0x7c   :  { %2892 = vmatprep.mubr.msk.f32.mxu0 %vm115_vm0, %v84_v0 }
  0x7f   :  { %370 = vmatmul.mubr.f32.gmra.mxu0 %v83_v2 }
  0x80   :  { %2893 = vmatprep.mubr.msk.f32.mxu0 %vm115_vm0, %v86_v3 }
  0x83   :  { %375 = vmatmul.mubr.f32.gmra.mxu0 %v85_v4 }
  0x84   :  { %2894 = vmatprep.mubr.msk.f32.mxu0 %vm115_vm0, %v88_v5 }
  0x87   :  { %380 = vmatmul.mubr.f32.gmra.mxu0 %v87_v6 }
  0x88   :  { %3115 = vmatprep.mubr.msk.f32.mxu0 %vm3169_vm4, %v3168_v1 }
  0xe7   :  { %v3500_v12 = vpop.f32.mrf.mxu0 }
  0xe9   :  { %v263_v13 = vpop.f32.mrf.mxu0 }
  0xeb   :  { %v266_v14 = vpop.f32.mrf.mxu0 }
  0xec   :  { %v267_v33 = vadd.f32 %v3505_v26, %v266_v14 }
  0xed   :  { %v268_v15 = vpop.f32.mrf.mxu0 }
  0xee   :  { %v386_v40 = vmax.f32 %v267_v33, 0.0 }
  0xef   :  { %v271_v16 = vpop.f32.mrf.mxu0 }
  0xf0   :  { %v272_v41 = vadd.f32 %v3505_v26, %v271_v16 }
  0xf1   :  { %v273_v17 = vpop.f32.mrf.mxu0 }
  0xf2   :  { %v387_v49 = vmax.f32 %v272_v41, 0.0 }
  0xf3   :  { %v276_v18 = vpop.f32.mrf.mxu0 }
  0xf4   :  { %v277_v50 = vadd.f32 %v3505_v26, %v276_v18 }
  0xf5   :  { %v278_v19 = vpop.f32.mrf.mxu0 }
  0xf6   :  { %v388_v58 = vmax.f32 %v277_v50, 0.0 }
  0xf7   :  { %v281_v20 = vpop.f32.mrf.mxu0 }
  0xf8   :  { %v282_v59 = vadd.f32 %v3505_v26, %v281_v20 }
  0xf9   :  { %v283_v21 = vpop.f32.mrf.mxu0 }
  0xfa   :  { %v389_v5 = vmax.f32 %v282_v59, 0.0 }
  0xfb   :  { %v286_v22 = vpop.f32.mrf.mxu0 }
  0xfc   :  { %v287_v6 = vadd.f32 %v3505_v26, %v286_v22 }
  0xfd   :  { %v288_v23 = vpop.f32.mrf.mxu0 }
  0xfe   :  { %v390_v15 = vmax.f32 %v287_v6, 0.0 }
  0xff   :  { %v291_v24 = vpop.f32.mrf.mxu0 }
 0x100   :  { %v292_v2 = vadd.f32 %v3505_v26, %v291_v24 }
 0x101   :  { %v293_v25 = vpop.f32.mrf.mxu0 }
 0x102   :  { %v391_v13 = vmax.f32 %v292_v2, 0.0 }
 0x103   :  { %v296_v27 = vpop.f32.mrf.mxu0 }
 0x104   :  { %v297_v28 = vadd.f32 %v3505_v26, %v296_v27 }
 0x105   :  { %v298_v29 = vpop.f32.mrf.mxu0 }
 0x106   :  { %v392_v31 = vmax.f32 %v297_v28, 0.0 }
 0x107   :  { %v301_v30 = vpop.f32.mrf.mxu0 }
 0x108   :  { %v302_v32 = vadd.f32 %v3505_v26, %v301_v30  ;;  %v3510_v37 = vrot.slane %v392_v31, 2 }
 0x109   :  { %v303_v34 = vpop.f32.mrf.mxu0 }
 0x10a   :  { %v393_v35 = vmax.f32 %v302_v32, 0.0 }
 0x10b   :  { %v306_v36 = vpop.f32.mrf.mxu0 }
 0x10c   :  { %v420_v38 = vrot.slane %v393_v35, 2  ;;  %v307_v39 = vadd.f32 %v3505_v26, %v306_v36 }
 0x10d   :  { %v308_v42 = vpop.f32.mrf.mxu0 }
 0x10e   :  { %v421_v43 = vsel %vm191_vm1, %v3510_v37, %v420_v38  ;;  %v394_v44 = vmax.f32 %v307_v39, 0.0 }
 0x10f   :  { %v3516_v45 = vmax.f32 %v386_v40, %v421_v43  ;;  %v311_v46 = vpop.f32.mrf.mxu0 }
 0x110   :  { %v422_v47 = vrot.slane %v394_v44, 2  ;;  %v312_v48 = vadd.f32 %v3505_v26, %v311_v46 }
 0x111   :  { %v313_v51 = vpop.f32.mrf.mxu0 }
 0x112   :  { %v423_v52 = vsel %vm191_vm1, %v420_v38, %v422_v47  ;;  %v395_v53 = vmax.f32 %v312_v48, 0.0  ;;  %v262_v48 = vadd.f32 %v3505_v26, %v3500_v12  ;;  %v417_v51 = vrot.slane %v391_v13, 2 }
 0x113   :  { %v3521_v54 = vmax.f32 %v387_v49, %v423_v52  ;;  %v316_v55 = vpop.f32.mrf.mxu0 }
 0x114   :  { %v424_v56 = vrot.slane %v395_v53, 2  ;;  %v317_v57 = vadd.f32 %v3505_v26, %v316_v55 }
 0x115   :  { %v318_v60 = vpop.f32.mrf.mxu0 }
 0x116   :  { %v425_v61 = vsel %vm191_vm1, %v422_v47, %v424_v56  ;;  %v396_v62 = vmax.f32 %v317_v57, 0.0  ;;  %v419_v57 = vsel %vm191_vm1, %v417_v51, %v3510_v37  ;;  %v385_v60 = vmax.f32 %v262_v48, 0.0 }
 0x117   :  { %v3526_v63 = vmax.f32 %v388_v58, %v425_v61  ;;  %v321_v0 = vpop.f32.mrf.mxu0 }
 0x118   :  { %v426_v3 = vrot.slane %v396_v62, 2  ;;  %v322_v4 = vadd.f32 %v3505_v26, %v321_v0 }
 0x119   :  { %v323_v7 = vpop.f32.mrf.mxu0 }
 0x11a   :  { %v427_v8 = vsel %vm191_vm1, %v424_v56, %v426_v3  ;;  %v397_v9 = vmax.f32 %v322_v4, 0.0 }
 0x11b   :  { %v3532_v10 = vmax.f32 %v389_v5, %v427_v8  ;;  %v326_v11 = vpop.f32.mrf.mxu0 }
 0x11c   :  { %v428_v14 = vrot.slane %v397_v9, 2  ;;  %v327_v42 = vadd.f32 %v3505_v26, %v326_v11 }
 0x11d   :  { %v328_v16 = vpop.f32.mrf.mxu0 }
 0x11e   :  { %v429_v17 = vsel %vm191_vm1, %v426_v3, %v428_v14  ;;  %v3535_v18 = vmax.f32 %v391_v13, %v428_v14  ;;  %v398_v52 = vmax.f32 %v327_v42, 0.0  ;;  %v437_v3 = vmax.f32 %v385_v60, %v419_v57  ;;  %v2903_v42 = vld [vmem:[%s4185_s3 + $0x50] sm:$0xff]  ;;  %v2906_v60 = vld [vmem:[%s4185_s3 + $0x60] sm:$0xff] }
 0x11f   :  { %v3537_v19 = vmax.f32 %v390_v15, %v429_v17  ;;  %v331_v20 = vpop.f32.mrf.mxu0 }
 0x120   :  { %v332_v13 = vadd.f32 %v3505_v26, %v331_v20 }
 0x121   :  { %v333_v21 = vpop.f32.mrf.mxu0 }
 0x123   :  { %v336_v22 = vpop.f32.mrf.mxu0 }
 0x124   :  { %v337_v5 = vadd.f32 %v3505_v26, %v336_v22  ;;  %v515_v22 = vld [vmem:[%s4185_s3 + $0x10] sm:$0xff] }
 0x125   :  { %v338_v23 = vpop.f32.mrf.mxu0 }
 0x126   :  { %v400_v23 = vmax.f32 %v337_v5, 0.0 }
 0x127   :  { %v341_v24 = vpop.f32.mrf.mxu0 }
 0x128   :  { %v342_v14 = vadd.f32 %v3505_v26, %v341_v24 }
 0x129   :  { %v343_v25 = vpop.f32.mrf.mxu0 }
 0x12b   :  { %v3539_v27 = vpop.f32.mrf.mxu0 }
 0x12d   :  { %v348_v28 = vpop.f32.mrf.mxu0 }
 0x12e   :  { %v514_v28 = vld [vmem:[%s4185_s3 + $0x8] sm:$0xff] }
 0x12f   :  { %v351_v29 = vpop.f32.mrf.mxu0 }
 0x130   :  { %v3542_v30 = vadd.f32 %v3505_v26, %v351_v29 }
 0x131   :  { %v353_v31 = vpop.f32.mrf.mxu0 }
 0x132   :  { %v403_v33 = vmax.f32 %v3542_v30, 0.0  ;;  %v513_v31 = vld [vmem:[%s4185_s3] sm:$0xff]  ;;  %v2907_v30 = vld [vmem:[%s4185_s3 + $0x68] sm:$0xff] }
 0x133   :  { %v356_v32 = vpop.f32.mrf.mxu0 }
 0x134   :  { %v357_v34 = vadd.f32 %v3505_v26, %v356_v32  ;;  %v451_v39 = vrot.slane %v403_v33, 2  ;;  %v399_v32 = vmax.f32 %v332_v13, 0.0  ;;  %v2923_v13 = vld [vmem:[%s4185_s3 + $0xd0] sm:$0xff] }
 0x135   :  { %v358_v35 = vpop.f32.mrf.mxu0 }
 0x136   :  { %v404_v36 = vmax.f32 %v357_v34, 0.0  ;;  %v401_v34 = vmax.f32 %v342_v14, 0.0  ;;  %v347_v35 = vadd.f32 %v3505_v26, %v3539_v27  ;;  %v2902_v27 = vld [vmem:[%s4185_s3 + $0x48] sm:$0xff] }
 0x137   :  { %v361_v38 = vpop.f32.mrf.mxu0  ;;  %v2922_v14 = vld [vmem:[%s4185_s3 + $0xc8] sm:$0xff] }
 0x138   :  { %v452_v40 = vrot.slane %v404_v36, 2  ;;  %v362_v41 = vadd.f32 %v3505_v26, %v361_v38  ;;  %v2904_v38 = vld [vmem:[%s4185_s3 + $0x58] sm:$0xff] }
 0x139   :  { %v363_v43 = vpop.f32.mrf.mxu0 }
 0x13a   :  { %v453_v44 = vsel %vm191_vm1, %v451_v39, %v452_v40  ;;  %v405_v46 = vmax.f32 %v362_v41, 0.0 }
 0x13b   :  { %v366_v47 = vpop.f32.mrf.mxu0  ;;  %v471_v53 = vmax.f32 %v397_v9, %v453_v44 }
 0x13c   :  { %v454_v49 = vrot.slane %v405_v46, 2  ;;  %v367_v50 = vadd.f32 %v3505_v26, %v366_v47  ;;  %v2901_v46 = vld [vmem:[%s4185_s3 + $0x40] sm:$0xff]  ;;  %v402_v47 = vmax.f32 %v347_v35, 0.0  ;;  %v2938_v35 = vld [vmem:[%s4185_s3 + $0x130] sm:$0xff] }
 0x13d   :  { %v368_v55 = vpop.f32.mrf.mxu0  ;;  %v486_v62 = vrot.slane %v471_v53, 4 }
 0x13e   :  { %v455_v56 = vsel %vm191_vm1, %v452_v40, %v454_v49  ;;  %v406_v61 = vmax.f32 %v367_v50, 0.0  ;;  %v2909_v50 = vld [vmem:[%s4185_s3 + $0x78] sm:$0xff]  ;;  %v2908_v55 = vld [vmem:[%s4185_s3 + $0x70] sm:$0xff] }
 0x13f   :  { %v3557_v58 = vmax.f32 %v398_v52, %v455_v56  ;;  %v371_v59 = vpop.f32.mrf.mxu0 }
 0x140   :  { %v372_v12 = vadd.f32 %v3505_v26, %v371_v59  ;;  %v456_v8 = vrot.slane %v406_v61, 2 }
 0x141   :  { %v487_v0 = vrot.slane %v3557_v58, 4  ;;  %v373_v2 = vpop.f32.mrf.mxu0  ;;  %v2911_v58 = vld [vmem:[%s4185_s3 + $0x80] sm:$0xff] }
 0x142   :  { %v407_v4 = vmax.f32 %v372_v12, 0.0  ;;  %v457_v20 = vsel %vm191_vm1, %v454_v49, %v456_v8 }
 0x143   :  { %v488_v37 = vsel %vm485_vm2, %v486_v62, %v487_v0  ;;  %v376_v6 = vpop.f32.mrf.mxu0  ;;  %v3596_v43 = vmax.f32 %v399_v32, %v457_v20  ;;  %v2914_v62 = vld [vmem:[%s4185_s3 + $0x98] sm:$0xff]  ;;  %v2933_v20 = vld [vmem:[%s4185_s3 + $0x110] sm:$0xff] }
 0x144   :  { %v3565_v7 = vmax.f32 %v437_v3, %v488_v37  ;;  %v458_v9 = vrot.slane %v407_v4, 2  ;;  %v377_v11 = vadd.f32 %v3505_v26, %v376_v6  ;;  %v2913_v4 = vld [vmem:[%s4185_s3 + $0x90] sm:$0xff]  ;;  %v2939_v32 = vld [vmem:[%s4185_s3 + $0x138] sm:$0xff] }
 0x145   :  { %v378_v15 = vpop.f32.mrf.mxu0  ;;  %v489_v56 = vrot.slane %v3596_v43, 4  ;;  %v2949_v43 = vld [vmem:[%s4185_s3 + $0x178] sm:$0xff] }
 0x146   :  { %v459_v16 = vsel %vm191_vm1, %v456_v8, %v458_v9  ;;  %v408_v17 = vmax.f32 %v377_v11, 0.0  ;;  %v523_v21 = vrot.slane %v3565_v7, 2  ;;  %v676_v53 = vrot.slane %v3565_v7, 4  ;;  %v2918_v8 = vld [vmem:[%s4185_s3 + $0xb0] sm:$0xff]  ;;  %v2921_v15 = vld [vmem:[%s4185_s3 + $0xc0] sm:$0xff] }
 0x147   :  { %v381_v25 = vpop.f32.mrf.mxu0  ;;  %v3586_v36 = vmax.f32 %v400_v23, %v459_v16  ;;  %v757_v3 = vrot.slane %v3565_v7, 6  ;;  %v2929_v16 = vld [vmem:[%s4185_s3 + $0xf8] sm:$0xff]  ;;  %v2926_v23 = vld [vmem:[%s4185_s3 + $0xe0] sm:$0xff] }
 0x148   :  { %v460_v24 = vrot.slane %v408_v17, 2  ;;  %v382_v29 = vadd.f32 %v3505_v26, %v381_v25  ;;  %2899 = vmatmul.mubr.msk.f32.vlgmr.msra.gmra.mxu1 %vm524_vm3, %v523_v21  ;;  %v2928_v21 = vld [vmem:[%s4185_s3 + $0xf0] sm:$0xff]  ;;  %v2934_v25 = vld [vmem:[%s4185_s3 + $0x118] sm:$0xff] }
 0x149   :  { %629 = vmatpush1.msra.mxu1 %v515_v22  ;;  %664 = vmatprep.mubr.f32.mxu1 %v3168_v1  ;;  %v383_v39 = vpop.f32.mrf.mxu0  ;;  %v491_v48 = vrot.slane %v3586_v36, 4  ;;  %v2927_v22 = vld [vmem:[%s4185_s3 + $0xe8] sm:$0xff] }
 0x14a   :  { %v461_v40 = vsel %vm191_vm1, %v458_v9, %v460_v24  ;;  %v409_v41 = vmax.f32 %v382_v29, 0.0  ;;  %630 = vmatprep.subr.mxu1 %v514_v28  ;;  %v2916_v9 = vld [vmem:[%s4185_s3 + $0xa0] sm:$0xff]  ;;  %v2932_v29 = vld [vmem:[%s4185_s3 + $0x108] sm:$0xff] }
 0x14b   :  { %v475_v26 = vmax.f32 %v401_v34, %v461_v40  ;;  %631 = vmatpush1.msra.mxu1 %v513_v31  ;;  %v2931_v31 = vld [vmem:[%s4185_s3 + $0x100] sm:$0xff]  ;;  %v2937_v36 = vld [vmem:[%s4185_s3 + $0x128] sm:$0xff]  ;;  %v2943_v40 = vld [vmem:[%s4185_s3 + $0x150] sm:$0xff] }
 0x14c   :  { %v462_v44 = vrot.slane %v409_v41, 2  ;;  %707 = vmatprep.subr.mxu1 %v2904_v38  ;;  %2900 = vmatmul.mubr.msk.f32.vlgmr.msra.gmra.mxu1 %vm524_vm3, %v3565_v7  ;;  %v2919_v7 = vld [vmem:[%s4185_s3 + $0xb8] sm:$0xff]  ;;  %v2936_v38 = vld [vmem:[%s4185_s3 + $0x120] sm:$0xff]  ;;  %v2942_v41 = vld [vmem:[%s4185_s3 + $0x148] sm:$0xff] }
 0x14d   :  { %v493_v49 = vrot.slane %v475_v26, 4  ;;  %708 = vmatpush1.msra.mxu1 %v2903_v42  ;;  %743 = vmatprep.mubr.f32.mxu1 %v3168_v1  ;;  %v2941_v42 = vld [vmem:[%s4185_s3 + $0x140] sm:$0xff] }
 0x14e   :  { %v463_v51 = vsel %vm191_vm1, %v460_v24, %v462_v44  ;;  %v477_v52 = vmax.f32 %v403_v33, %v462_v44  ;;  %709 = vmatprep.subr.mxu1 %v2902_v27  ;;  %v492_v24 = vsel %vm485_vm2, %v489_v56, %v491_v48  ;;  %v2948_v27 = vld [vmem:[%s4185_s3 + $0x170] sm:$0xff]  ;;  %v2947_v44 = vld [vmem:[%s4185_s3 + $0x168] sm:$0xff] }
 0x14f   :  { %v494_v57 = vsel %vm485_vm2, %v491_v48, %v493_v49  ;;  %v476_v59 = vmax.f32 %v402_v47, %v463_v51  ;;  %710 = vmatpush1.msra.mxu1 %v2901_v46  ;;  %v508_v34 = vmax.f32 %v3521_v54, %v492_v24  ;;  %v2944_v54 = vld [vmem:[%s4185_s3 + $0x158] sm:$0xff]  ;;  %v2946_v46 = vld [vmem:[%s4185_s3 + $0x160] sm:$0xff] }
 0x150   :  { %v497_v33 = vrot.slane %v477_v52, 4  ;;  %788 = vmatprep.subr.mxu1 %v2909_v50  ;;  %2905 = vmatmul.mubr.msk.f32.vlgmr.msra.gmra.mxu1 %vm524_vm3, %v676_v53  ;;  %v3630_v61 = vmax.f32 %v3526_v63, %v494_v57  ;;  %v490_v63 = vsel %vm485_vm2, %v487_v0, %v489_v56  ;;  %v2954_v47 = vld [vmem:[%s4185_s3 + $0x198] sm:$0xff]  ;;  %v2952_v50 = vld [vmem:[%s4185_s3 + $0x188] sm:$0xff]  ;;  %v2951_v51 = vld [vmem:[%s4185_s3 + $0x180] sm:$0xff] }
 0x151   :  { %v495_v12 = vrot.slane %v476_v59, 4  ;;  %789 = vmatpush1.msra.mxu1 %v2908_v55  ;;  %824 = vmatprep.mubr.f32.mxu1 %v3168_v1  ;;  %v1243_v39 = vrot.slane %v508_v34, 2  ;;  %v1324_v26 = vrot.slane %v508_v34, 4  ;;  %v1405_v48 = vrot.slane %v508_v34, 6  ;;  %v2959_v52 = vld [vmem:[%s4185_s3 + $0x1b8] sm:$0xff]  ;;  %v2958_v53 = vld [vmem:[%s4185_s3 + $0x1b0] sm:$0xff] }
 0x152   :  { %v3637_v2 = vmax.f32 %v3535_v18, %v497_v33  ;;  %790 = vmatprep.subr.mxu1 %v2907_v30  ;;  %v2912_v18 = vld [vmem:[%s4185_s3 + $0x88] sm:$0xff]  ;;  %v2956_v56 = vld [vmem:[%s4185_s3 + $0x1a0] sm:$0xff]  ;;  %v2964_v57 = vld [vmem:[%s4185_s3 + $0x1d8] sm:$0xff]  ;;  %v1567_v59 = vrot.slane %v3630_v61, 2 }
 0x153   :  { %v496_v5 = vsel %vm485_vm2, %v493_v49, %v495_v12  ;;  %v498_v37 = vsel %vm485_vm2, %v495_v12, %v497_v33  ;;  %791 = vmatpush1.msra.mxu1 %v2906_v60  ;;  %v2953_v49 = vld [vmem:[%s4185_s3 + $0x190] sm:$0xff]  ;;  %v2957_v55 = vld [vmem:[%s4185_s3 + $0x1a8] sm:$0xff]  ;;  %v2961_v60 = vld [vmem:[%s4185_s3 + $0x1c0] sm:$0xff] }
 0x154   :  { %v3654_v6 = vmax.f32 %v3537_v19, %v498_v37  ;;  %869 = vmatprep.subr.mxu1 %v2914_v62  ;;  %2910 = vmatmul.mubr.msk.f32.vlgmr.msra.gmra.mxu1 %vm524_vm3, %v757_v3  ;;  %v3661_v0 = vmax.f32 %v3532_v10, %v496_v5  ;;  %v507_v19 = vmax.f32 %v3516_v45, %v490_v63  ;;  %v2917_v10 = vld [vmem:[%s4185_s3 + $0xa8] sm:$0xff]  ;;  %v2924_v45 = vld [vmem:[%s4185_s3 + $0xd8] sm:$0xff]  ;;  %v2963_v30 = vld [vmem:[%s4185_s3 + $0x1d0] sm:$0xff]  ;;  %v1648_v62 = vrot.slane %v3630_v61, 4 }
 0x155   :  { %870 = vmatpush1.msra.mxu1 %v2913_v4  ;;  %905 = vmatprep.mubr.f32.mxu1 %v3168_v1  ;;  %v2962_v33 = vld [vmem:[%s4185_s3 + $0x1c8] sm:$0xff]  ;;  %v2969_v12 = vld [vmem:[%s4185_s3 + $0x1f8] sm:$0xff]  ;;  %v2968_v3 = vld [vmem:[%s4185_s3 + $0x1f0] sm:$0xff]  ;;  %v1729_v37 = vrot.slane %v3630_v61, 6 }
 0x156   :  { %871 = vmatprep.subr.mxu1 %v2912_v18  ;;  %v919_v11 = vrot.slane %v507_v19, 2  ;;  %v1000_v17 = vrot.slane %v507_v19, 4  ;;  %v1081_v28 = vrot.slane %v507_v19, 6  ;;  %v2967_v4 = vld [vmem:[%s4185_s3 + $0x1e8] sm:$0xff]  ;;  %v2966_v63 = vld [vmem:[%s4185_s3 + $0x1e0] sm:$0xff]  ;;  %v2974_v5 = vld [vmem:[%s4185_s3 + $0x218] sm:$0xff] }
 0x157   :  { %872 = vmatpush1.msra.mxu1 %v2911_v58  ;;  %v2973_v18 = vld [vmem:[%s4185_s3 + $0x210] sm:$0xff]  ;;  %v2972_v58 = vld [vmem:[%s4185_s3 + $0x208] sm:$0xff]  ;;  %v2991_v24 = vld [vmem:[%s4185_s3 + $0x280] sm:$0xff] }
 0x158   :  { %950 = vmatprep.subr.mxu1 %v2919_v7  ;;  %2915 = vmatmul.mubr.msk.f32.vlgmr.msra.gmra.mxu1 %vm524_vm3, %v507_v19  ;;  %v2971_v7 = vld [vmem:[%s4185_s3 + $0x200] sm:$0xff]  ;;  %v2978_v19 = vld [vmem:[%s4185_s3 + $0x230] sm:$0xff] }
 0x159   :  { %951 = vmatpush1.msra.mxu1 %v2918_v8  ;;  %986 = vmatprep.mubr.f32.mxu1 %v3168_v1  ;;  %v2977_v8 = vld [vmem:[%s4185_s3 + $0x228] sm:$0xff] }
 0x15a   :  { %952 = vmatprep.subr.mxu1 %v2917_v10  ;;  %v2976_v10 = vld [vmem:[%s4185_s3 + $0x220] sm:$0xff] }
 0x15b   :  { %953 = vmatpush1.msra.mxu1 %v2916_v9  ;;  %v2984_v9 = vld [vmem:[%s4185_s3 + $0x258] sm:$0xff] }
 0x15c   :  { %1031 = vmatprep.subr.mxu1 %v2924_v45  ;;  %2920 = vmatmul.mubr.msk.f32.vlgmr.msra.gmra.mxu1 %vm524_vm3, %v919_v11  ;;  %v1891_v45 = vrot.slane %v3661_v0, 2  ;;  %v2983_v11 = vld [vmem:[%s4185_s3 + $0x250] sm:$0xff] }
 0x15d   :  { %1032 = vmatpush1.msra.mxu1 %v2923_v13  ;;  %1067 = vmatprep.mubr.f32.mxu1 %v3168_v1  ;;  %v2982_v13 = vld [vmem:[%s4185_s3 + $0x248] sm:$0xff] }
 0x15e   :  { %1033 = vmatprep.subr.mxu1 %v2922_v14  ;;  %v2981_v14 = vld [vmem:[%s4185_s3 + $0x240] sm:$0xff] }
 0x15f   :  { %1034 = vmatpush1.msra.mxu1 %v2921_v15  ;;  %v2989_v15 = vld [vmem:[%s4185_s3 + $0x278] sm:$0xff] }
 0x160   :  { %1112 = vmatprep.subr.mxu1 %v2929_v16  ;;  %2925 = vmatmul.mubr.msk.f32.vlgmr.msra.gmra.mxu1 %vm524_vm3, %v1000_v17  ;;  %v1972_v16 = vrot.slane %v3661_v0, 4  ;;  %v2988_v17 = vld [vmem:[%s4185_s3 + $0x270] sm:$0xff] }
 0x161   :  { %1113 = vmatpush1.msra.mxu1 %v2928_v21  ;;  %1148 = vmatprep.mubr.f32.mxu1 %v3168_v1  ;;  %v2987_v21 = vld [vmem:[%s4185_s3 + $0x268] sm:$0xff] }
 0x162   :  { %1114 = vmatprep.subr.mxu1 %v2927_v22  ;;  %v2986_v22 = vld [vmem:[%s4185_s3 + $0x260] sm:$0xff] }
 0x163   :  { %1115 = vmatpush1.msra.mxu1 %v2926_v23  ;;  %v2994_v23 = vld [vmem:[%s4185_s3 + $0x298] sm:$0xff] }
 0x164   :  { %1193 = vmatprep.subr.mxu1 %v2934_v25  ;;  %2930 = vmatmul.mubr.msk.f32.vlgmr.msra.gmra.mxu1 %vm524_vm3, %v1081_v28  ;;  %v2053_v25 = vrot.slane %v3661_v0, 6  ;;  %v2993_v28 = vld [vmem:[%s4185_s3 + $0x290] sm:$0xff] }
 0x165   :  { %1194 = vmatpush1.msra.mxu1 %v2933_v20  ;;  %1229 = vmatprep.mubr.f32.mxu1 %v3168_v1  ;;  %v2992_v20 = vld [vmem:[%s4185_s3 + $0x288] sm:$0xff] }
 0x166   :  { %1195 = vmatprep.subr.mxu1 %v2932_v29  ;;  %v2998_v29 = vld [vmem:[%s4185_s3 + $0x2b0] sm:$0xff] }
 0x167   :  { %1196 = vmatpush1.msra.mxu1 %v2931_v31  ;;  %v2997_v31 = vld [vmem:[%s4185_s3 + $0x2a8] sm:$0xff] }
 0x168   :  { %1274 = vmatprep.subr.mxu1 %v2939_v32  ;;  %2935 = vmatmul.mubr.msk.f32.vlgmr.msra.gmra.mxu1 %vm524_vm3, %v508_v34  ;;  %v2996_v32 = vld [vmem:[%s4185_s3 + $0x2a0] sm:$0xff]  ;;  %v3004_v34 = vld [vmem:[%s4185_s3 + $0x2d8] sm:$0xff] }
 0x169   :  { %1275 = vmatpush1.msra.mxu1 %v2938_v35  ;;  %1310 = vmatprep.mubr.f32.mxu1 %v3168_v1  ;;  %v2215_v35 = vrot.slane %v3654_v6, 2 }
 0x16a   :  { %1276 = vmatprep.subr.mxu1 %v2937_v36  ;;  %v3003_v36 = vld [vmem:[%s4185_s3 + $0x2d0] sm:$0xff] }
 0x16b   :  { %1277 = vmatpush1.msra.mxu1 %v2936_v38  ;;  %v3002_v38 = vld [vmem:[%s4185_s3 + $0x2c8] sm:$0xff] }
 0x16c   :  { %1355 = vmatprep.subr.mxu1 %v2944_v54  ;;  %2940 = vmatmul.mubr.msk.f32.vlgmr.msra.gmra.mxu1 %vm524_vm3, %v1243_v39  ;;  %v3001_v54 = vld [vmem:[%s4185_s3 + $0x2c0] sm:$0xff]  ;;  %v3009_v39 = vld [vmem:[%s4185_s3 + $0x2f8] sm:$0xff] }
 0x16d   :  { %1356 = vmatpush1.msra.mxu1 %v2943_v40  ;;  %1391 = vmatprep.mubr.f32.mxu1 %v3168_v1  ;;  %v2296_v40 = vrot.slane %v3654_v6, 4 }
 0x16e   :  { %1357 = vmatprep.subr.mxu1 %v2942_v41  ;;  %v3008_v41 = vld [vmem:[%s4185_s3 + $0x2f0] sm:$0xff] }
 0x16f   :  { %1358 = vmatpush1.msra.mxu1 %v2941_v42  ;;  %v3007_v42 = vld [vmem:[%s4185_s3 + $0x2e8] sm:$0xff] }
 0x170   :  { %1436 = vmatprep.subr.mxu1 %v2949_v43  ;;  %2945 = vmatmul.mubr.msk.f32.vlgmr.msra.gmra.mxu1 %vm524_vm3, %v1324_v26  ;;  %v3006_v43 = vld [vmem:[%s4185_s3 + $0x2e0] sm:$0xff]  ;;  %v3014_v26 = vld [vmem:[%s4185_s3 + $0x318] sm:$0xff] }
 0x171   :  { %1437 = vmatpush1.msra.mxu1 %v2948_v27  ;;  %1472 = vmatprep.mubr.f32.mxu1 %v3168_v1  ;;  %v2377_v27 = vrot.slane %v3654_v6, 6 }
 0x172   :  { %1438 = vmatprep.subr.mxu1 %v2947_v44  ;;  %v3013_v44 = vld [vmem:[%s4185_s3 + $0x310] sm:$0xff] }
 0x173   :  { %1439 = vmatpush1.msra.mxu1 %v2946_v46  ;;  %v3012_v46 = vld [vmem:[%s4185_s3 + $0x308] sm:$0xff] }
 0x174   :  { %1517 = vmatprep.subr.mxu1 %v2954_v47  ;;  %2950 = vmatmul.mubr.msk.f32.vlgmr.msra.gmra.mxu1 %vm524_vm3, %v1405_v48  ;;  %v3011_v47 = vld [vmem:[%s4185_s3 + $0x300] sm:$0xff]  ;;  %v2565_v48 = vld [vmem:[%s4187_s5 + $0x78] sm:$0xff] }
 0x175   :  { %1518 = vmatpush1.msra.mxu1 %v2953_v49  ;;  %1553 = vmatprep.mubr.f32.mxu1 %v3168_v1  ;;  %v2580_v49 = vld [vmem:[%s4187_s5 + $0xf0] sm:$0xff] }
 0x176   :  { %1519 = vmatprep.subr.mxu1 %v2952_v50  ;;  %v2564_v50 = vld [vmem:[%s4187_s5 + $0x70] sm:$0xff] }
 0x177   :  { %1520 = vmatpush1.msra.mxu1 %v2951_v51  ;;  %v2563_v51 = vld [vmem:[%s4187_s5 + $0x68] sm:$0xff] }
 0x178   :  { %1598 = vmatprep.subr.mxu1 %v2959_v52  ;;  %2955 = vmatmul.mubr.msk.f32.vlgmr.msra.gmra.mxu1 %vm524_vm3, %v3630_v61  ;;  %v2979_v61 = vld [vmem:[%s4185_s3 + $0x238] sm:$0xff]  ;;  %v2578_v52 = vld [vmem:[%s4187_s5 + $0xe0] sm:$0xff] }
 0x179   :  { %1599 = vmatpush1.msra.mxu1 %v2958_v53  ;;  %1634 = vmatprep.mubr.f32.mxu1 %v3168_v1  ;;  %v2562_v53 = vld [vmem:[%s4187_s5 + $0x60] sm:$0xff] }
 0x17a   :  { %1600 = vmatprep.subr.mxu1 %v2957_v55  ;;  %v2577_v55 = vld [vmem:[%s4187_s5 + $0xd8] sm:$0xff] }
 0x17b   :  { %1601 = vmatpush1.msra.mxu1 %v2956_v56  ;;  %v2561_v56 = vld [vmem:[%s4187_s5 + $0x58] sm:$0xff] }
 0x17c   :  { %1679 = vmatprep.subr.mxu1 %v2964_v57  ;;  %2960 = vmatmul.mubr.msk.f32.vlgmr.msra.gmra.mxu1 %vm524_vm3, %v1567_v59  ;;  %v2576_v57 = vld [vmem:[%s4187_s5 + $0xd0] sm:$0xff] }
 0x17d   :  { %1680 = vmatpush1.msra.mxu1 %v2963_v30  ;;  %1715 = vmatprep.mubr.f32.mxu1 %v3168_v1  ;;  %v2560_v59 = vld [vmem:[%s4187_s5 + $0x50] sm:$0xff]  ;;  %v2575_v30 = vld [vmem:[%s4187_s5 + $0xc8] sm:$0xff] }
 0x17e   :  { %1681 = vmatprep.subr.mxu1 %v2962_v33  ;;  %v2559_v33 = vld [vmem:[%s4187_s5 + $0x48] sm:$0xff] }
 0x17f   :  { %1682 = vmatpush1.msra.mxu1 %v2961_v60  ;;  %v2574_v60 = vld [vmem:[%s4187_s5 + $0xc0] sm:$0xff] }
 0x180   :  { %1760 = vmatprep.subr.mxu1 %v2969_v12  ;;  %2965 = vmatmul.mubr.msk.f32.vlgmr.msra.gmra.mxu1 %vm524_vm3, %v1648_v62  ;;  %v2558_v12 = vld [vmem:[%s4187_s5 + $0x40] sm:$0xff]  ;;  %v2573_v62 = vld [vmem:[%s4187_s5 + $0xb8] sm:$0xff] }
 0x181   :  { %1761 = vmatpush1.msra.mxu1 %v2968_v3  ;;  %1796 = vmatprep.mubr.f32.mxu1 %v3168_v1  ;;  %v2557_v3 = vld [vmem:[%s4187_s5 + $0x38] sm:$0xff] }
 0x182   :  { %1762 = vmatprep.subr.mxu1 %v2967_v4  ;;  %v2572_v4 = vld [vmem:[%s4187_s5 + $0xb0] sm:$0xff] }
 0x183   :  { %1763 = vmatpush1.msra.mxu1 %v2966_v63  ;;  %v2556_v63 = vld [vmem:[%s4187_s5 + $0x30] sm:$0xff] }
 0x184   :  { %1841 = vmatprep.subr.mxu1 %v2974_v5  ;;  %2970 = vmatmul.mubr.msk.f32.vlgmr.msra.gmra.mxu1 %vm524_vm3, %v1729_v37  ;;  %v2571_v5 = vld [vmem:[%s4187_s5 + $0xa8] sm:$0xff] }
 0x185   :  { %1842 = vmatpush1.msra.mxu1 %v2973_v18  ;;  %1877 = vmatprep.mubr.f32.mxu1 %v3168_v1  ;;  %v2555_v37 = vld [vmem:[%s4187_s5 + $0x28] sm:$0xff]  ;;  %v2570_v18 = vld [vmem:[%s4187_s5 + $0xa0] sm:$0xff] }
 0x186   :  { %1843 = vmatprep.subr.mxu1 %v2972_v58  ;;  %v2554_v58 = vld [vmem:[%s4187_s5 + $0x20] sm:$0xff] }
 0x187   :  { %1844 = vmatpush1.msra.mxu1 %v2971_v7  ;;  %v2569_v7 = vld [vmem:[%s4187_s5 + $0x98] sm:$0xff] }
 0x188   :  { %1922 = vmatprep.subr.mxu1 %v2979_v61  ;;  %2975 = vmatmul.mubr.msk.f32.vlgmr.msra.gmra.mxu1 %vm524_vm3, %v3661_v0  ;;  %v2999_v0 = vld [vmem:[%s4185_s3 + $0x2b8] sm:$0xff] }
 0x189   :  { %1923 = vmatpush1.msra.mxu1 %v2978_v19  ;;  %1958 = vmatprep.mubr.f32.mxu1 %v3168_v1  ;;  %v2553_v61 = vld [vmem:[%s4187_s5 + $0x18] sm:$0xff]  ;;  %v2568_v19 = vld [vmem:[%s4187_s5 + $0x90] sm:$0xff] }
 0x18a   :  { %1924 = vmatprep.subr.mxu1 %v2977_v8  ;;  %v2552_v8 = vld [vmem:[%s4187_s5 + $0x10] sm:$0xff] }
 0x18b   :  { %1925 = vmatpush1.msra.mxu1 %v2976_v10  ;;  %v2567_v10 = vld [vmem:[%s4187_s5 + $0x88] sm:$0xff] }
 0x18c   :  { %2003 = vmatprep.subr.mxu1 %v2984_v9  ;;  %2980 = vmatmul.mubr.msk.f32.vlgmr.msra.gmra.mxu1 %vm524_vm3, %v1891_v45  ;;  %v2551_v9 = vld [vmem:[%s4187_s5 + $0x8] sm:$0xff]  ;;  %v2566_v45 = vld [vmem:[%s4187_s5 + $0x80] sm:$0xff] }
 0x18d   :  { %2004 = vmatpush1.msra.mxu1 %v2983_v11  ;;  %2039 = vmatprep.mubr.f32.mxu1 %v3168_v1  ;;  %v2550_v11 = vld [vmem:[%s4187_s5] sm:$0xff] }
 0x18e   :  { %2005 = vmatprep.subr.mxu1 %v2982_v13  ;;  %v2674_v13 = vld [vmem:[%s4189_s7 + $0x70] sm:$0xff] }
 0x18f   :  { %2006 = vmatpush1.msra.mxu1 %v2981_v14  ;;  %v2673_v14 = vld [vmem:[%s4189_s7 + $0x68] sm:$0xff]  ;;  %3086 = vmatpush3.msra.mxu0 %v2674_v13 }
 0x190   :  { %2084 = vmatprep.subr.mxu1 %v2989_v15  ;;  %2985 = vmatmul.mubr.msk.f32.vlgmr.msra.gmra.mxu1 %vm524_vm3, %v1972_v16  ;;  %v2672_v15 = vld [vmem:[%s4189_s7 + $0x60] sm:$0xff]  ;;  %v2671_v16 = vld [vmem:[%s4189_s7 + $0x58] sm:$0xff] }
 0x191   :  { %2085 = vmatpush1.msra.mxu1 %v2988_v17  ;;  %2120 = vmatprep.mubr.f32.mxu1 %v3168_v1  ;;  %v2670_v17 = vld [vmem:[%s4189_s7 + $0x50] sm:$0xff] }
 0x192   :  { %2086 = vmatprep.subr.mxu1 %v2987_v21  ;;  %3087 = vmatprep.subr.mxu0 %v3168_v1  ;;  %v2669_v21 = vld [vmem:[%s4189_s7 + $0x48] sm:$0xff] }
 0x193   :  { %2087 = vmatpush1.msra.mxu1 %v2986_v22  ;;  %3088 = vmatpush3.msra.mxu0 %v2673_v14  ;;  %v2668_v22 = vld [vmem:[%s4189_s7 + $0x40] sm:$0xff] }
 0x194   :  { %2165 = vmatprep.subr.mxu1 %v2994_v23  ;;  %2990 = vmatmul.mubr.msk.f32.vlgmr.msra.gmra.mxu1 %vm524_vm3, %v2053_v25  ;;  %v2667_v23 = vld [vmem:[%s4189_s7 + $0x38] sm:$0xff]  ;;  %v2666_v25 = vld [vmem:[%s4189_s7 + $0x30] sm:$0xff] }
 0x195   :  { %2166 = vmatpush1.msra.mxu1 %v2993_v28  ;;  %2201 = vmatprep.mubr.f32.mxu1 %v3168_v1  ;;  %v2665_v28 = vld [vmem:[%s4189_s7 + $0x28] sm:$0xff] }
 0x196   :  { %2167 = vmatprep.subr.mxu1 %v2992_v20  ;;  %3089 = vmatprep.subr.mxu0 %v3168_v1  ;;  %v2664_v20 = vld [vmem:[%s4189_s7 + $0x20] sm:$0xff] }
 0x197   :  { %2168 = vmatpush1.msra.mxu1 %v2991_v24  ;;  %3090 = vmatpush3.msra.mxu0 %v2672_v15  ;;  %v2663_v24 = vld [vmem:[%s4189_s7 + $0x18] sm:$0xff] }
 0x198   :  { %2246 = vmatprep.subr.mxu1 %v2999_v0  ;;  %2995 = vmatmul.mubr.msk.f32.vlgmr.msra.gmra.mxu1 %vm524_vm3, %v3654_v6  ;;  %v2581_v6 = vld [vmem:[%s4187_s5 + $0xf8] sm:$0xff] }
 0x199   :  { %2247 = vmatpush1.msra.mxu1 %v2998_v29  ;;  %2282 = vmatprep.mubr.f32.mxu1 %v3168_v1  ;;  %v2662_v29 = vld [vmem:[%s4189_s7 + $0x10] sm:$0xff] }
 0x19a   :  { %2248 = vmatprep.subr.mxu1 %v2997_v31  ;;  %3091 = vmatprep.subr.mxu0 %v3168_v1 }
 0x19b   :  { %2249 = vmatpush1.msra.mxu1 %v2996_v32  ;;  %3092 = vmatpush3.msra.mxu0 %v2671_v16  ;;  %v2661_v32 = vld [vmem:[%s4189_s7 + $0x8] sm:$0xff] }
 0x19c   :  { %2327 = vmatprep.subr.mxu1 %v3004_v34  ;;  %3000 = vmatmul.mubr.msk.f32.vlgmr.msra.gmra.mxu1 %vm524_vm3, %v2215_v35 }
 0x19d   :  { %2328 = vmatpush1.msra.mxu1 %v3003_v36  ;;  %2363 = vmatprep.mubr.f32.mxu1 %v3168_v1 }
 0x19e   :  { %2329 = vmatprep.subr.mxu1 %v3002_v38  ;;  %3093 = vmatprep.subr.mxu0 %v3168_v1 }
 0x19f   :  { %2330 = vmatpush1.msra.mxu1 %v3001_v54  ;;  %3094 = vmatpush3.msra.mxu0 %v2670_v17 }
 0x1a0   :  { %2408 = vmatprep.subr.mxu1 %v3009_v39  ;;  %3005 = vmatmul.mubr.msk.f32.vlgmr.msra.gmra.mxu1 %vm524_vm3, %v2296_v40 }
 0x1a1   :  { %2409 = vmatpush1.msra.mxu1 %v3008_v41  ;;  %2444 = vmatprep.mubr.f32.mxu1 %v3168_v1 }
 0x1a2   :  { %2410 = vmatprep.subr.mxu1 %v3007_v42  ;;  %3095 = vmatprep.subr.mxu0 %v3168_v1 }
 0x1a3   :  { %2411 = vmatpush1.msra.mxu1 %v3006_v43  ;;  %3096 = vmatpush3.msra.mxu0 %v2669_v21 }
 0x1a4   :  { %2489 = vmatprep.subr.mxu1 %v3014_v26  ;;  %3010 = vmatmul.mubr.msk.f32.vlgmr.msra.gmra.mxu1 %vm524_vm3, %v2377_v27 }
 0x1a5   :  { %2490 = vmatpush1.msra.mxu1 %v3013_v44  ;;  %2525 = vmatprep.mubr.f32.mxu1 %v3168_v1 }
 0x1a6   :  { %2491 = vmatprep.subr.mxu1 %v3012_v46  ;;  %3097 = vmatprep.subr.mxu0 %v3168_v1 }
 0x1a7   :  { %2492 = vmatpush1.msra.mxu1 %v3011_v47  ;;  %3098 = vmatpush3.msra.mxu0 %v2668_v22 }
 0x1a8   :  { %3015 = vmatmul.mubr.msk.f32.vlgmr.msra.gmra.mxu1 %vm524_vm3, %v3637_v2  ;;  %3022 = vmatprep.subr.mxu1 %v2581_v6  ;;  %v2579_v2 = vld [vmem:[%s4187_s5 + $0xe8] sm:$0xff] }
 0x1a9   :  { %3023 = vmatpush3.msra.mxu1 %v2565_v48  ;;  %3099 = vmatprep.subr.mxu0 %v3168_v1 }
 0x1aa   :  { %3024 = vmatprep.subr.mxu1 %v2580_v49  ;;  %3100 = vmatpush3.msra.mxu0 %v2667_v23 }
 0x1ab   :  { %3025 = vmatpush3.msra.mxu1 %v2564_v50  ;;  %3101 = vmatprep.subr.mxu0 %v3168_v1 }
 0x1ac   :  { %3026 = vmatprep.subr.mxu1 %v2579_v2  ;;  %3102 = vmatpush3.msra.mxu0 %v2666_v25 }
 0x1ad   :  { %3027 = vmatpush3.msra.mxu1 %v2563_v51  ;;  %3103 = vmatprep.subr.mxu0 %v3168_v1 }
 0x1ae   :  { %3028 = vmatprep.subr.mxu1 %v2578_v52  ;;  %3104 = vmatpush3.msra.mxu0 %v2665_v28 }
 0x1af   :  { %3029 = vmatpush3.msra.mxu1 %v2562_v53  ;;  %3105 = vmatprep.subr.mxu0 %v3168_v1 }
 0x1b0   :  { %3030 = vmatprep.subr.mxu1 %v2577_v55  ;;  %3106 = vmatpush3.msra.mxu0 %v2664_v20 }
 0x1b1   :  { %3031 = vmatpush3.msra.mxu1 %v2561_v56  ;;  %3107 = vmatprep.subr.mxu0 %v3168_v1 }
 0x1b2   :  { %3032 = vmatprep.subr.mxu1 %v2576_v57  ;;  %3108 = vmatpush3.msra.mxu0 %v2663_v24 }
 0x1b3   :  { %3033 = vmatpush3.msra.mxu1 %v2560_v59  ;;  %3109 = vmatprep.subr.mxu0 %v3168_v1 }
 0x1b4   :  { %3034 = vmatprep.subr.mxu1 %v2575_v30  ;;  %3110 = vmatpush3.msra.mxu0 %v2662_v29 }
 0x1b5   :  { %3035 = vmatpush3.msra.mxu1 %v2559_v33  ;;  %3111 = vmatprep.subr.mxu0 %v3168_v1 }
 0x1b6   :  { %3036 = vmatprep.subr.mxu1 %v2574_v60  ;;  %3112 = vmatpush3.msra.mxu0 %v2661_v32 }
 0x1b7   :  { %3037 = vmatpush3.msra.mxu1 %v2558_v12  ;;  %3113 = vmatprep.subr.mxu0 %v3168_v1 }
 0x1b8   :  { %3038 = vmatprep.subr.mxu1 %v2573_v62 }
 0x1b9   :  { %3039 = vmatpush3.msra.mxu1 %v2557_v3 }
 0x1ba   :  { %3040 = vmatprep.subr.mxu1 %v2572_v4 }
 0x1bb   :  { %3041 = vmatpush3.msra.mxu1 %v2556_v63 }
 0x1bc   :  { %3042 = vmatprep.subr.mxu1 %v2571_v5 }
 0x1bd   :  { %3043 = vmatpush3.msra.mxu1 %v2555_v37 }
 0x1be   :  { %3044 = vmatprep.subr.mxu1 %v2570_v18 }
 0x1bf   :  { %3045 = vmatpush3.msra.mxu1 %v2554_v58 }
 0x1c0   :  { %3046 = vmatprep.subr.mxu1 %v2569_v7 }
 0x1c1   :  { %3047 = vmatpush3.msra.mxu1 %v2553_v61 }
 0x1c2   :  { %3048 = vmatprep.subr.mxu1 %v2568_v19 }
 0x1c3   :  { %3049 = vmatpush3.msra.mxu1 %v2552_v8 }
 0x1c4   :  { %3050 = vmatprep.subr.mxu1 %v2567_v10 }
 0x1c5   :  { %3051 = vmatpush3.msra.mxu1 %v2551_v9 }
 0x1c6   :  { %3052 = vmatprep.subr.mxu1 %v2566_v45 }
 0x1c7   :  { %3053 = vmatpush3.msra.mxu1 %v2550_v11 }
 0x1c8   :  { %3118 = vmatprep.subr.mxu1 %v3168_v1 }
 0x208   :  { %v593_v0 = vpop.f32.mrf.mxu1 }
 0x20a   :  { %v595_v31 = vpop.f32.mrf.mxu1 }
 0x20c   :  { %v666_v34 = vpop.f32.mrf.mxu1 }
 0x20d   :  { %v667_v56 = vadd.f32 %v666_v34, %v593_v0 }
 0x20e   :  { %v668_v35 = vpop.f32.mrf.mxu1 }
 0x20f   :  { %v669_v59 = vadd.f32 %v668_v35, %v595_v31 }
 0x210   :  { %v745_v36 = vpop.f32.mrf.mxu1 }
 0x211   :  { %v750_v30 = vadd.f32 %v745_v36, %v667_v56 }
 0x212   :  { %v747_v38 = vpop.f32.mrf.mxu1 }
 0x213   :  { %v751_v60 = vadd.f32 %v747_v38, %v669_v59 }
 0x214   :  { %v826_v54 = vpop.f32.mrf.mxu1 }
 0x215   :  { %v831_v12 = vadd.f32 %v826_v54, %v750_v30 }
 0x216   :  { %v828_v39 = vpop.f32.mrf.mxu1 }
 0x217   :  { %v832_v3 = vadd.f32 %v828_v39, %v751_v60 }
 0x218   :  { %v907_v40 = vpop.f32.mrf.mxu1 }
 0x219   :  { %v912_v4 = vadd.f32 %v907_v40, %v831_v12 }
 0x21a   :  { %v909_v41 = vpop.f32.mrf.mxu1 }
 0x21b   :  { %v913_v5 = vadd.f32 %v909_v41, %v832_v3 }
 0x21c   :  { %v988_v42 = vpop.f32.mrf.mxu1 }
 0x21d   :  { %v993_v37 = vadd.f32 %v988_v42, %v912_v4 }
 0x21e   :  { %v990_v43 = vpop.f32.mrf.mxu1 }
 0x21f   :  { %v994_v58 = vadd.f32 %v990_v43, %v913_v5 }
 0x220   :  { %v1069_v26 = vpop.f32.mrf.mxu1 }
 0x221   :  { %v1074_v7 = vadd.f32 %v1069_v26, %v993_v37 }
 0x222   :  { %v1071_v27 = vpop.f32.mrf.mxu1 }
 0x223   :  { %v1075_v19 = vadd.f32 %v1071_v27, %v994_v58  ;;  %v2536_v27 = vlaneseq }
 0x224   :  { %v1150_v44 = vpop.f32.mrf.mxu1 }
 0x225   :  { %v1155_v8 = vadd.f32 %v1150_v44, %v1074_v7 }
 0x226   :  { %v1152_v46 = vpop.f32.mrf.mxu1 }
 0x227   :  { %v1156_v9 = vadd.f32 %v1152_v46, %v1075_v19 }
 0x228   :  { %v1231_v47 = vpop.f32.mrf.mxu1 }
 0x229   :  { %v1236_v45 = vadd.f32 %v1231_v47, %v1155_v8 }
 0x22a   :  { %v1233_v6 = vpop.f32.mrf.mxu1 }
 0x22b   :  { %v1237_v13 = vadd.f32 %v1233_v6, %v1156_v9  ;;  %v2660_v9 = vld [vmem:[%s4189_s7] sm:$0xff] }
 0x22c   :  { %v1312_v48 = vpop.f32.mrf.mxu1  ;;  %3114 = vmatpush3.msra.mxu0 %v2660_v9 }
 0x22d   :  { %v1317_v14 = vadd.f32 %v1312_v48, %v1236_v45  ;;  %v2767_v45 = vld [vmem:[%s4191_s9 + $0x50] sm:$0xf] }
 0x22e   :  { %v1314_v49 = vpop.f32.mrf.mxu1 }
 0x22f   :  { %v1318_v16 = vadd.f32 %v1314_v49, %v1237_v13  ;;  %v2765_v13 = vld [vmem:[%s4191_s9 + $0x40] sm:$0xff] }
 0x230   :  { %v1393_v50 = vpop.f32.mrf.mxu1 }
 0x231   :  { %v1398_v17 = vadd.f32 %v1393_v50, %v1317_v14  ;;  %v2537_v50 = vshrl.u32 %v2536_v27, 7  ;;  %v2764_v14 = vld [vmem:[%s4191_s9 + $0x38] sm:$0xff] }
 0x232   :  { %v1395_v2 = vpop.f32.mrf.mxu1 }
 0x233   :  { %v1399_v22 = vadd.f32 %v1395_v2, %v1318_v16  ;;  %v2542_v60 = vsub.s32 1, %v2537_v50  ;;  %v2762_v16 = vld [vmem:[%s4191_s9 + $0x28] sm:$0xff] }
 0x234   :  { %v1474_v51 = vpop.f32.mrf.mxu1 }
 0x235   :  { %v1479_v23 = vadd.f32 %v1474_v51, %v1398_v17  ;;  %v2761_v17 = vld [vmem:[%s4191_s9 + $0x20] sm:$0xff] }
 0x236   :  { %v1476_v52 = vpop.f32.mrf.mxu1 }
 0x237   :  { %v1480_v28 = vadd.f32 %v1476_v52, %v1399_v22 }
 0x238   :  { %v1555_v53 = vpop.f32.mrf.mxu1 }
 0x239   :  { %v1560_v20 = vadd.f32 %v1555_v53, %v1479_v23  ;;  %v3016_v23 = vld [vmem:[%s4188_s6] ss:$0 sm:$0xff] }
 0x23a   :  { %v1557_v55 = vpop.f32.mrf.mxu1 }
 0x23b   :  { %v1561_v0 = vadd.f32 %v1557_v55, %v1480_v28 }
 0x23c   :  { %v1636_v57 = vpop.f32.mrf.mxu1 }
 0x23d   :  { %v1641_v29 = vadd.f32 %v1636_v57, %v1560_v20  ;;  %v2538_v57 = vsub.s32 0, %v2537_v50 }
 0x23e   :  { %v1638_v33 = vpop.f32.mrf.mxu1 }
 0x23f   :  { %v1642_v32 = vadd.f32 %v1638_v33, %v1561_v0  ;;  %v2534_v33 = vld [vmem:[%s4186_s4] sm:$0x3]  ;;  %v2759_v0 = vld [vmem:[%s4191_s9 + $0x10] sm:$0xff] }
 0x240   :  { %v1717_v62 = vpop.f32.mrf.mxu1 }
 0x241   :  { %v1722_v34 = vadd.f32 %v1717_v62, %v1641_v29  ;;  %v2758_v29 = vld [vmem:[%s4191_s9 + $0x8] sm:$0xff] }
 0x242   :  { %v1719_v63 = vpop.f32.mrf.mxu1 }
 0x243   :  { %v1723_v36 = vadd.f32 %v1719_v63, %v1642_v32  ;;  %v2539_v63 = vrot.slane %v2534_v33, %v2538_v57  ;;  %v3017_v32 = vld [vmem:[%s4190_s8] ss:$0 sm:$0xff] }
 0x244   :  { %v1798_v18 = vpop.f32.mrf.mxu1 }
 0x245   :  { %v1803_v38 = vadd.f32 %v1798_v18, %v1722_v34  ;;  %v2543_v18 = vrot.slane %v2534_v33, %v2542_v60 }
 0x246   :  { %v1800_v61 = vpop.f32.mrf.mxu1 }
 0x247   :  { %v1804_v39 = vadd.f32 %v1800_v61, %v1723_v36 }
 0x248   :  { %v1879_v10 = vpop.f32.mrf.mxu1 }
 0x249   :  { %v1884_v40 = vadd.f32 %v1879_v10, %v1803_v38 }
 0x24a   :  { %v1881_v11 = vpop.f32.mrf.mxu1 }
 0x24b   :  { %v1885_v42 = vadd.f32 %v1881_v11, %v1804_v39  ;;  %v2766_v11 = vld [vmem:[%s4191_s9 + $0x48] sm:$0xff] }
 0x24c   :  { %v1960_v15 = vpop.f32.mrf.mxu1 }
 0x24d   :  { %v1965_v43 = vadd.f32 %v1960_v15, %v1884_v40  ;;  %v2763_v15 = vld [vmem:[%s4191_s9 + $0x30] sm:$0xff] }
 0x24e   :  { %v1962_v21 = vpop.f32.mrf.mxu1 }
 0x24f   :  { %v1966_v44 = vadd.f32 %v1962_v21, %v1885_v42  ;;  %v2760_v21 = vld [vmem:[%s4191_s9 + $0x18] sm:$0xff] }
 0x250   :  { %v2041_v25 = vpop.f32.mrf.mxu1 }
 0x251   :  { %v2046_v46 = vadd.f32 %v2041_v25, %v1965_v43 }
 0x252   :  { %v2043_v24 = vpop.f32.mrf.mxu1 }
 0x253   :  { %v2047_v6 = vadd.f32 %v2043_v24, %v1966_v44 }
 0x254   :  { %v2122_v31 = vpop.f32.mrf.mxu1 }
 0x255   :  { %v2127_v48 = vadd.f32 %v2122_v31, %v2046_v46  ;;  %v2757_v31 = vld [vmem:[%s4191_s9] sm:$0xff]  ;;  %s3146_s9 = scalar_lea.vmem %s2861_s24, 32 }
 0x256   :  { %v2124_v35 = vpop.f32.mrf.mxu1  ;;  %p3147_p0 = scmp.ne.s32.totalorder %s2861_s24, %s3146_s9  ;;  %p3152_p2 = scmp.lt.s32.totalorder %s3146_s9, %s3146_s9 }
 0x257   :  { %v2128_v2 = vadd.f32 %v2124_v35, %v2047_v6 }
 0x258   :  { %v2203_v54 = vpop.f32.mrf.mxu1  ;;  %p3153_p3 = por %p3152_p2, %p3151_p1 }
 0x259   :  { %v2208_v51 = vadd.f32 %v2203_v54, %v2127_v48  ;;  %v3019_v54 = vld [vmem:[%s4192_s10] ss:$0 sm:$0xff] }
 0x25a   :  { %v2205_v41 = vpop.f32.mrf.mxu1  ;;  %p3154_p4 = pnand %p3153_p3, %p3147_p0 }
 0x25b   :  { %v2209_v53 = vadd.f32 %v2205_v41, %v2128_v2 }
 0x25c   :  { %v2284_v26 = vpop.f32.mrf.mxu1 }
 0x25d   :  { %v2289_v55 = vadd.f32 %v2284_v26, %v2208_v51 }
 0x25e   :  { %v2286_v47 = vpop.f32.mrf.mxu1 }
 0x25f   :  { %v2290_v59 = vadd.f32 %v2286_v47, %v2209_v53 }
 0x260   :  { %v2365_v49 = vpop.f32.mrf.mxu1 }
 0x261   :  { %v2370_v30 = vadd.f32 %v2365_v49, %v2289_v55 }
 0x262   :  { %v2367_v52 = vpop.f32.mrf.mxu1 }
 0x263   :  { %v2371_v62 = vadd.f32 %v2367_v52, %v2290_v59 }
 0x264   :  { %v2446_v56 = vpop.f32.mrf.mxu1 }
 0x265   :  { %v2451_v3 = vadd.f32 %v2446_v56, %v2370_v30 }
 0x266   :  { %v2448_v12 = vpop.f32.mrf.mxu1 }
 0x267   :  { %v2452_v5 = vadd.f32 %v2448_v12, %v2371_v62 }
 0x268   :  { %v2527_v4 = vpop.f32.mrf.mxu1 }
 0x269   :  { %v2532_v37 = vadd.f32 %v2527_v4, %v2451_v3 }
 0x26a   :  { %v2529_v58 = vpop.f32.mrf.mxu1 }
 0x26b   :  { %v2533_v7 = vadd.f32 %v2529_v58, %v2452_v5  ;;  %v2546_v61 = vadd.f32 %v2539_v63, %v2532_v37 }
 0x26d   :  { %v2547_v19 = vadd.f32 %v2543_v18, %v2533_v7  ;;  %v2548_v10 = vmax.f32 %v2546_v61, 0.0 }
 0x26f   :  { %v2549_v8 = vmax.f32 %v2547_v19, 0.0 }
 0x271   :  { %2653 = vmatprep.mubr.f32.mxu1 %v2549_v8 }
 0x272   :  { %2654 = vmatmul.mubr.f32.vlgmr.msra.gmra.mxu1 %v2548_v10 }
 0x273   :  { %3140 = vmatprep.mubr.msk.f32.mxu1 %vm3169_vm4, %v3168_v1  ;;  %3119 = vmatpush3.msk.msra.mxu1 %vm485_vm2, %v2767_v45 }
 0x274   :  { %3120 = vmatprep.subr.mxu1 %v3168_v1 }
 0x275   :  { %3121 = vmatpush3.msra.mxu1 %v2766_v11 }
 0x276   :  { %3122 = vmatprep.subr.mxu1 %v3168_v1 }
 0x277   :  { %3123 = vmatpush3.msra.mxu1 %v2765_v13 }
 0x278   :  { %3124 = vmatprep.subr.mxu1 %v3168_v1 }
 0x279   :  { %3125 = vmatpush3.msra.mxu1 %v2764_v14 }
 0x27a   :  { %3126 = vmatprep.subr.mxu1 %v3168_v1 }
 0x27b   :  { %3127 = vmatpush3.msra.mxu1 %v2763_v15 }
 0x27c   :  { %3128 = vmatprep.subr.mxu1 %v3168_v1 }
 0x27d   :  { %3129 = vmatpush3.msra.mxu1 %v2762_v16 }
 0x27e   :  { %3130 = vmatprep.subr.mxu1 %v3168_v1 }
 0x27f   :  { %3131 = vmatpush3.msra.mxu1 %v2761_v17 }
 0x280   :  { %3132 = vmatprep.subr.mxu1 %v3168_v1 }
 0x281   :  { %3133 = vmatpush3.msra.mxu1 %v2760_v21 }
 0x282   :  { %3134 = vmatprep.subr.mxu1 %v3168_v1 }
 0x283   :  { %3135 = vmatpush3.msra.mxu1 %v2759_v0 }
 0x284   :  { %3136 = vmatprep.subr.mxu1 %v3168_v1 }
 0x285   :  { %3137 = vmatpush3.msra.mxu1 %v2758_v29 }
 0x286   :  { %3138 = vmatprep.subr.mxu1 %v3168_v1 }
 0x287   :  { %3139 = vmatpush3.msra.mxu1 %v2757_v31 }
 0x332   :  { %v3054_v22 = vpop.f32.mrf.mxu1 }
 0x334   :  { %v3055_v25 = vpop.f32.mrf.mxu1 }
 0x335   :  { %v3056_v28 = vadd.f32 %v3055_v25, %v3054_v22 }
 0x337   :  { %v2656_v20 = vadd.f32 %v3056_v28, %v3016_v23 }
 0x339   :  { %v2659_v24 = vmax.f32 %v2656_v20, 0.0 }
 0x33b   :  { %3116 = vmatmul.mubr.msk.f32.vlgmr.msra.gmra.mxu0 %vm2682_vm5, %v2659_v24 }
 0x3fb   :  { %v2752_v34 = vpop.f32.mrf.mxu0 }
 0x3fc   :  { %v2753_v35 = vadd.f32 %v3017_v32, %v2752_v34 }
 0x3fd   :  { %v3117_v36 = vpop.f32.mrf.mxu0 }
 0x3fe   :  { %v2756_v38 = vmax.f32 %v2753_v35, 0.0 }
 0x400   :  { %3141 = vmatmul.mubr.msk.f32.vlgmr.msra.gmra.mxu1 %vm2775_vm6, %v2756_v38 }
 0x4c0   :  { %v2848_v39 = vpop.f32.mrf.mxu1 }
 0x4c1   :  { %v2849_v1 = vadd.f32 %v3019_v54, %v2848_v39 }
 0x4c2   :  { %v3142_v40 = vpop.f32.mrf.mxu1 }
 0x4c3   :  { %2853 = vst.msk [vmem:[#allocation2] sm:$0x3] %vm2852_vm7, %v2849_v1 }
 0x4c4   :  { %3157 = shalt.err (!%p3154_p4)
}
 0x4c5   :  { %2863 = dma.vmem_to_hbm [thread:$0]  %s2861_s24, 32, %s4193_s11, [#allocation3]  }
 0x4c6   :  { %3166 = dma.done.wait [#allocation3], 32  }
 0x4c7   :  { %3167 = vsyncadd [#allocation3], 4294967264 }
 0x4c8   :  { %2867 = vsyncpa [#allocation3], 1 }

</bundles_post_ra>
